<compile_context>
chip_gen: v5e
topology: v5e:2x2
jax: 0.10.0
libtpu: 0.0.40
codegen_flags: <defaults>
</compile_context>

<pallas_src>
import math
import jax
import jax.numpy as jnp
from jax.experimental import pallas as pl
from jax.experimental.pallas import tpu as pltpu

# ----------------------------- model config ---------------------------------
B, T, S = 2, 8, 8          # batch, target length, source (memory) length
D, H, D_FF = 32, 4, 64     # model dim, heads, feed-forward dim
DK = D // H
NEG_INF = -1e9
LN_EPS = 1e-5              # nn.LayerNorm default


# ------------------------------ fused kernel ---------------------------------
def _decoder_layer_kernel(
    # scalar prefetch (SMEM): per-batch valid key lengths
    tgt_len_ref, src_len_ref,
    # tiled inputs
    x_ref, m_ref,
    ln0_g_ref, ln0_b_ref, sa_wqkv_ref, sa_bqkv_ref, sa_wo_ref, sa_bo_ref,
    ln1_g_ref, ln1_b_ref, ca_wq_ref, ca_bq_ref, ca_wkv_ref, ca_bkv_ref,
    ca_wo_ref, ca_bo_ref,
    ln2_g_ref, ln2_b_ref, ff_w1_ref, ff_b1_ref, ff_w2_ref, ff_b2_ref,
    o_ref,
):
    b = pl.program_id(0)
    bf16 = jnp.bfloat16

    def layer_norm(x, g_ref, b_ref):
        # single-pass variance (E[x^2] - mean^2); gamma folded into one scale
        mean = jnp.mean(x, axis=-1, keepdims=True)
        msq = jnp.mean(x * x, axis=-1, keepdims=True)
        var = msq - mean * mean
        scale = jax.lax.rsqrt(var + LN_EPS) * g_ref[...]
        return x * scale + (b_ref[...] - mean * scale)

    def mha(q, k, v, bias):
        # q: [Tq, D] f32, k/v: [Tk, D] f32, bias: [Tq, Tk] f32 additive.
        # Fold 1/sqrt(dk) into Q once; matmul operands bf16, accumulate f32.
        q = (q * (1.0 / math.sqrt(DK))).astype(bf16)
        k = k.astype(bf16)
        v = v.astype(bf16)
        outs = []
        for h in range(H):                       # tiny static unroll (H=4)
            qh = q[:, h * DK:(h + 1) * DK]
            kh = k[:, h * DK:(h + 1) * DK]
            vh = v[:, h * DK:(h + 1) * DK]
            # q @ k^T without materializing a transpose: contract last dims.
            s = jax.lax.dot_general(
                qh, kh, (((1,), (1,)), ((), ())),
                preferred_element_type=jnp.float32) + bias
            s = s - jnp.max(s, axis=-1, keepdims=True)
            p = jnp.exp(s)
            p = p * pl.reciprocal(jnp.sum(p, axis=-1, keepdims=True), approx=True)
            outs.append(jnp.dot(p.astype(bf16), vh,
                                preferred_element_type=jnp.float32))
        # one lane-dense [Tq, D] value per batch (no masked column stores)
        return jnp.concatenate(outs, axis=-1)

    # ---- in-kernel mask construction from per-batch lengths ----
    t_len = tgt_len_ref[b]
    s_len = src_len_ref[b]
    rows_t = jax.lax.broadcasted_iota(jnp.int32, (T, T), 0)
    cols_t = jax.lax.broadcasted_iota(jnp.int32, (T, T), 1)
    tgt_bias = jnp.where((cols_t <= rows_t) & (cols_t < t_len), 0.0, NEG_INF)
    cols_s = jax.lax.broadcasted_iota(jnp.int32, (T, S), 1)
    src_bias = jnp.where(cols_s < s_len, 0.0, NEG_INF)

    x = x_ref[...]          # [T, D] f32 (this batch)
    mem = m_ref[...]        # [S, D] f32 (this batch)

    # ---- sublayer 0: self-attention (pre-norm residual) ----
    h0 = layer_norm(x, ln0_g_ref, ln0_b_ref)
    qkv = (jnp.dot(h0.astype(bf16), sa_wqkv_ref[...],
                   preferred_element_type=jnp.float32)
           + sa_bqkv_ref[...])                                   # fused QKV: [T, 3D]
    a = mha(qkv[:, 0:D], qkv[:, D:2 * D], qkv[:, 2 * D:3 * D], tgt_bias)
    x = x + (jnp.dot(a.astype(bf16), sa_wo_ref[...],
                     preferred_element_type=jnp.float32) + sa_bo_ref[...])

    # ---- sublayer 1: cross-attention on memory ----
    h1 = layer_norm(x, ln1_g_ref, ln1_b_ref)
    q = (jnp.dot(h1.astype(bf16), ca_wq_ref[...],
                 preferred_element_type=jnp.float32) + ca_bq_ref[...])
    kv = (jnp.dot(mem.astype(bf16), ca_wkv_ref[...],
                  preferred_element_type=jnp.float32)
          + ca_bkv_ref[...])                                     # fused KV: [S, 2D]
    a = mha(q, kv[:, 0:D], kv[:, D:2 * D], src_bias)
    x = x + (jnp.dot(a.astype(bf16), ca_wo_ref[...],
                     preferred_element_type=jnp.float32) + ca_bo_ref[...])

    # ---- sublayer 2: position-wise feed-forward ----
    h2 = layer_norm(x, ln2_g_ref, ln2_b_ref)
    ff = jnp.maximum(
        jnp.dot(h2.astype(bf16), ff_w1_ref[...],
                preferred_element_type=jnp.float32) + ff_b1_ref[...],
        0.0)                                                     # ReLU; dropout = identity
    x = x + (jnp.dot(ff.astype(bf16), ff_w2_ref[...],
                     preferred_element_type=jnp.float32) + ff_b2_ref[...])

    o_ref[...] = x


# ------------------------------ wrapper ---------------------------------------
def _w_spec(shape):
    nd = len(shape)
    # constant index_map -> weight block stays VMEM-resident across grid iterations
    return pl.BlockSpec(shape, lambda *args, _nd=nd: (0,) * _nd)


def decoder_layer(params, x, memory, tgt_len, src_len):
    Bb, Tt, Dm = x.shape
    Ss = memory.shape[1]
    assert (Bb, Tt, Ss, Dm) == (B, T, S, D)
    x2d = x.reshape(Bb * Tt, Dm)
    m2d = memory.reshape(Bb * Ss, Dm)
    bf16 = jnp.bfloat16

    args = (
        x2d, m2d,
        params["ln0_g"].reshape(1, Dm), params["ln0_b"].reshape(1, Dm),
        params["sa_wqkv"].astype(bf16), params["sa_bqkv"].reshape(1, 3 * Dm),
        params["sa_wo"].astype(bf16), params["sa_bo"].reshape(1, Dm),
        params["ln1_g"].reshape(1, Dm), params["ln1_b"].reshape(1, Dm),
        params["ca_wq"].astype(bf16), params["ca_bq"].reshape(1, Dm),
        params["ca_wkv"].astype(bf16), params["ca_bkv"].reshape(1, 2 * Dm),
        params["ca_wo"].astype(bf16), params["ca_bo"].reshape(1, Dm),
        params["ln2_g"].reshape(1, Dm), params["ln2_b"].reshape(1, Dm),
        params["ff_w1"].astype(bf16), params["ff_b1"].reshape(1, D_FF),
        params["ff_w2"].astype(bf16), params["ff_b2"].reshape(1, Dm),
    )

    x_spec = pl.BlockSpec((Tt, Dm), lambda b, *_: (b, 0))
    m_spec = pl.BlockSpec((Ss, Dm), lambda b, *_: (b, 0))
    in_specs = [x_spec, m_spec] + [_w_spec(a.shape) for a in args[2:]]

    out = pl.pallas_call(
        _decoder_layer_kernel,
        out_shape=jax.ShapeDtypeStruct((Bb * Tt, Dm), jnp.float32),
        grid_spec=pltpu.PrefetchScalarGridSpec(
            num_scalar_prefetch=2,           # tgt_len, src_len -> SMEM
            grid=(Bb,),                      # per-batch grid, shardable across TCs
            in_specs=in_specs,
            out_specs=pl.BlockSpec((Tt, Dm), lambda b, *_: (b, 0)),
        ),
        compiler_params=pltpu.CompilerParams(
            dimension_semantics=("parallel",)),
    )(tgt_len, src_len, *args)
    return out.reshape(Bb, Tt, Dm)


# ------------------------------ param init ------------------------------------
def init_params(key):
    ks = iter(jax.random.split(key, 32))
    w = lambda shape: jax.random.normal(next(ks), shape, jnp.float32) * 0.02
    z = lambda n: jnp.zeros((n,), jnp.float32)
    o = lambda n: jnp.ones((n,), jnp.float32)
    p = {}
    for i in range(3):
        p[f"ln{i}_g"], p[f"ln{i}_b"] = o(D), z(D)
    # self-attention: fused QKV (mathematically identical to 3 separate nn.Linear)
    p["sa_wqkv"] = jnp.concatenate([w((D, D)) for _ in range(3)], axis=1)   # [D, 3D]
    p["sa_bqkv"] = jnp.concatenate([z(D) for _ in range(3)])                # [3D]
    p["sa_wo"], p["sa_bo"] = w((D, D)), z(D)
    # cross-attention: Q on x, fused KV on memory
    p["ca_wq"], p["ca_bq"] = w((D, D)), z(D)
    p["ca_wkv"] = jnp.concatenate([w((D, D)) for _ in range(2)], axis=1)    # [D, 2D]
    p["ca_bkv"] = jnp.concatenate([z(D) for _ in range(2)])                 # [2D]
    p["ca_wo"], p["ca_bo"] = w((D, D)), z(D)
    # feed-forward
    p["ff_w1"], p["ff_b1"] = w((D, D_FF)), z(D_FF)
    p["ff_w2"], p["ff_b2"] = w((D_FF, D)), z(D)
    return p


# --------------------------------- main ---------------------------------------
if __name__ == "__main__":
    key = jax.random.PRNGKey(0)
    kx, km, kp = jax.random.split(key, 3)

    x = jax.random.normal(kx, (B, T, D), jnp.float32)
    memory = jax.random.normal(km, (B, S, D), jnp.float32)
    params = init_params(kp)

    # Mask semantics of the reference: causal tgt mask + key-padding masks.
    # batch 0: no padding; batch 1: last tgt position and last 2 src positions padded.
    tgt_len = jnp.array([T, T - 1], jnp.int32)   # valid target-key length per batch
    src_len = jnp.array([S, S - 2], jnp.int32)   # valid source-key length per batch

    out = decoder_layer(params, x, memory, tgt_len, src_len)
    jax.block_until_ready(out)
    assert out.shape == (B, T, D) and bool(jnp.all(jnp.isfinite(out)))
    print("KERNEL_OK")
</pallas_src>

<mosaic_0001>
module attributes {stable_mosaic.version = 11 : i64} {
  func.func @_decoder_layer_kernel(%arg0: i32, %arg1: memref<2xi32, #tpu.memory_space<smem>>, %arg2: memref<2xi32, #tpu.memory_space<smem>>, %arg3: memref<8x32xf32, #tpu.memory_space<vmem>>, %arg4: memref<8x32xf32, #tpu.memory_space<vmem>>, %arg5: memref<1x32xf32, #tpu.memory_space<vmem>>, %arg6: memref<1x32xf32, #tpu.memory_space<vmem>>, %arg7: memref<32x96xbf16, #tpu.memory_space<vmem>>, %arg8: memref<1x96xf32, #tpu.memory_space<vmem>>, %arg9: memref<32x32xbf16, #tpu.memory_space<vmem>>, %arg10: memref<1x32xf32, #tpu.memory_space<vmem>>, %arg11: memref<1x32xf32, #tpu.memory_space<vmem>>, %arg12: memref<1x32xf32, #tpu.memory_space<vmem>>, %arg13: memref<32x32xbf16, #tpu.memory_space<vmem>>, %arg14: memref<1x32xf32, #tpu.memory_space<vmem>>, %arg15: memref<32x64xbf16, #tpu.memory_space<vmem>>, %arg16: memref<1x64xf32, #tpu.memory_space<vmem>>, %arg17: memref<32x32xbf16, #tpu.memory_space<vmem>>, %arg18: memref<1x32xf32, #tpu.memory_space<vmem>>, %arg19: memref<1x32xf32, #tpu.memory_space<vmem>>, %arg20: memref<1x32xf32, #tpu.memory_space<vmem>>, %arg21: memref<32x64xbf16, #tpu.memory_space<vmem>>, %arg22: memref<1x64xf32, #tpu.memory_space<vmem>>, %arg23: memref<64x32xbf16, #tpu.memory_space<vmem>>, %arg24: memref<1x32xf32, #tpu.memory_space<vmem>>, %arg25: memref<8x32xf32, #tpu.memory_space<vmem>>) attributes {dimension_semantics = [#tpu.dimension_semantics<parallel>], iteration_bounds = array<i64: 2>, scalar_prefetch = 2 : i64, scratch_operands = 0 : i64, tpu.core_type = #tpu.core_type<tc>, window_params = [{transform_indices = @transform_0, window_bounds = array<i64: 8, 32>}, {transform_indices = @transform_1, window_bounds = array<i64: 8, 32>}, {pipeline_mode = #tpu.pipeline_mode<synchronous>, transform_indices = @transform_2, window_bounds = array<i64: 1, 32>}, {pipeline_mode = #tpu.pipeline_mode<synchronous>, transform_indices = @transform_3, window_bounds = array<i64: 1, 32>}, {pipeline_mode = #tpu.pipeline_mode<synchronous>, transform_indices = @transform_4, window_bounds = array<i64: 32, 96>}, {pipeline_mode = #tpu.pipeline_mode<synchronous>, transform_indices = @transform_5, window_bounds = array<i64: 1, 96>}, {pipeline_mode = #tpu.pipeline_mode<synchronous>, transform_indices = @transform_6, window_bounds = array<i64: 32, 32>}, {pipeline_mode = #tpu.pipeline_mode<synchronous>, transform_indices = @transform_7, window_bounds = array<i64: 1, 32>}, {pipeline_mode = #tpu.pipeline_mode<synchronous>, transform_indices = @transform_8, window_bounds = array<i64: 1, 32>}, {pipeline_mode = #tpu.pipeline_mode<synchronous>, transform_indices = @transform_9, window_bounds = array<i64: 1, 32>}, {pipeline_mode = #tpu.pipeline_mode<synchronous>, transform_indices = @transform_10, window_bounds = array<i64: 32, 32>}, {pipeline_mode = #tpu.pipeline_mode<synchronous>, transform_indices = @transform_11, window_bounds = array<i64: 1, 32>}, {pipeline_mode = #tpu.pipeline_mode<synchronous>, transform_indices = @transform_12, window_bounds = array<i64: 32, 64>}, {pipeline_mode = #tpu.pipeline_mode<synchronous>, transform_indices = @transform_13, window_bounds = array<i64: 1, 64>}, {pipeline_mode = #tpu.pipeline_mode<synchronous>, transform_indices = @transform_14, window_bounds = array<i64: 32, 32>}, {pipeline_mode = #tpu.pipeline_mode<synchronous>, transform_indices = @transform_15, window_bounds = array<i64: 1, 32>}, {pipeline_mode = #tpu.pipeline_mode<synchronous>, transform_indices = @transform_16, window_bounds = array<i64: 1, 32>}, {pipeline_mode = #tpu.pipeline_mode<synchronous>, transform_indices = @transform_17, window_bounds = array<i64: 1, 32>}, {pipeline_mode = #tpu.pipeline_mode<synchronous>, transform_indices = @transform_18, window_bounds = array<i64: 32, 64>}, {pipeline_mode = #tpu.pipeline_mode<synchronous>, transform_indices = @transform_19, window_bounds = array<i64: 1, 64>}, {pipeline_mode = #tpu.pipeline_mode<synchronous>, transform_indices = @transform_20, window_bounds = array<i64: 64, 32>}, {pipeline_mode = #tpu.pipeline_mode<synchronous>, transform_indices = @transform_21, window_bounds = array<i64: 1, 32>}, {transform_indices = @transform_22, window_bounds = array<i64: 8, 32>}]} {
    %0 = arith.index_cast %arg0 : i32 to index
    %1 = memref.load %arg1[%0] : memref<2xi32, #tpu.memory_space<smem>>
    %2 = arith.index_cast %arg0 : i32 to index
    %3 = memref.load %arg2[%2] : memref<2xi32, #tpu.memory_space<smem>>
    %4 = tpu.iota {dimensions = array<i32: 0>} : vector<8x8xi32>
    %5 = tpu.iota {dimensions = array<i32: 1>} : vector<8x8xi32>
    %6 = arith.cmpi sle, %5, %4 : vector<8x8xi32>
    %7 = vector.broadcast %1 : i32 to vector<8x8xi32>
    %8 = arith.cmpi slt, %5, %7 : vector<8x8xi32>
    %9 = arith.andi %6, %8 : vector<8x8xi1>
    %cst = arith.constant 0.000000e+00 : f32
    %cst_0 = arith.constant -1.000000e+09 : f32
    %10 = vector.broadcast %cst : f32 to vector<8x8xf32>
    %11 = vector.broadcast %cst_0 : f32 to vector<8x8xf32>
    %12 = arith.select %9, %10, %11 : vector<8x8xi1>, vector<8x8xf32>
    %13 = tpu.iota {dimensions = array<i32: 1>} : vector<8x8xi32>
    %14 = vector.broadcast %3 : i32 to vector<8x8xi32>
    %15 = arith.cmpi slt, %13, %14 : vector<8x8xi32>
    %cst_1 = arith.constant 0.000000e+00 : f32
    %cst_2 = arith.constant -1.000000e+09 : f32
    %16 = vector.broadcast %cst_1 : f32 to vector<8x8xf32>
    %17 = vector.broadcast %cst_2 : f32 to vector<8x8xf32>
    %18 = arith.select %15, %16, %17 : vector<8x8xi1>, vector<8x8xf32>
    %c0 = arith.constant 0 : index
    %c0_3 = arith.constant 0 : index
    %19 = vector.load %arg3[%c0, %c0_3] : memref<8x32xf32, #tpu.memory_space<vmem>>, vector<8x32xf32>
    %c0_4 = arith.constant 0 : index
    %c0_5 = arith.constant 0 : index
    %20 = vector.load %arg4[%c0_4, %c0_5] : memref<8x32xf32, #tpu.memory_space<vmem>>, vector<8x32xf32>
    %cst_6 = arith.constant dense<0.000000e+00> : vector<8xf32>
    %21 = vector.multi_reduction <add>, %19, %cst_6 [1] : vector<8x32xf32> to vector<8xf32>
    %22 = vector.shape_cast %21 : vector<8xf32> to vector<8x1xf32>
    %cst_7 = arith.constant 3.200000e+01 : f32
    %23 = vector.broadcast %cst_7 : f32 to vector<8x1xf32>
    %24 = arith.divf %22, %23 : vector<8x1xf32>
    %25 = arith.mulf %19, %19 : vector<8x32xf32>
    %cst_8 = arith.constant dense<0.000000e+00> : vector<8xf32>
    %26 = vector.multi_reduction <add>, %25, %cst_8 [1] : vector<8x32xf32> to vector<8xf32>
    %27 = vector.shape_cast %26 : vector<8xf32> to vector<8x1xf32>
    %cst_9 = arith.constant 3.200000e+01 : f32
    %28 = vector.broadcast %cst_9 : f32 to vector<8x1xf32>
    %29 = arith.divf %27, %28 : vector<8x1xf32>
    %30 = arith.mulf %24, %24 : vector<8x1xf32>
    %31 = arith.subf %29, %30 : vector<8x1xf32>
    %cst_10 = arith.constant 9.99999974E-6 : f32
    %32 = vector.broadcast %cst_10 : f32 to vector<8x1xf32>
    %33 = arith.addf %31, %32 : vector<8x1xf32>
    %34 = math.rsqrt %33 : vector<8x1xf32>
    %c0_11 = arith.constant 0 : index
    %c0_12 = arith.constant 0 : index
    %35 = vector.load %arg5[%c0_11, %c0_12] : memref<1x32xf32, #tpu.memory_space<vmem>>, vector<1x32xf32>
    %36 = vector.broadcast %34 : vector<8x1xf32> to vector<8x32xf32>
    %37 = vector.broadcast %35 : vector<1x32xf32> to vector<8x32xf32>
    %38 = arith.mulf %36, %37 : vector<8x32xf32>
    %39 = arith.mulf %19, %38 : vector<8x32xf32>
    %c0_13 = arith.constant 0 : index
    %c0_14 = arith.constant 0 : index
    %40 = vector.load %arg6[%c0_13, %c0_14] : memref<1x32xf32, #tpu.memory_space<vmem>>, vector<1x32xf32>
    %41 = vector.broadcast %24 : vector<8x1xf32> to vector<8x32xf32>
    %42 = arith.mulf %41, %38 : vector<8x32xf32>
    %43 = vector.broadcast %40 : vector<1x32xf32> to vector<8x32xf32>
    %44 = arith.subf %43, %42 : vector<8x32xf32>
    %45 = arith.addf %39, %44 : vector<8x32xf32>
    %46 = arith.truncf %45 : vector<8x32xf32> to vector<8x32xbf16>
    %c0_15 = arith.constant 0 : index
    %c0_16 = arith.constant 0 : index
    %47 = vector.load %arg7[%c0_15, %c0_16] : memref<32x96xbf16, #tpu.memory_space<vmem>>, vector<32x96xbf16>
    %cst_17 = arith.constant dense<0.000000e+00> : vector<8x96xf32>
    %48 = tpu.matmul %46, %47, %cst_17 {dimension_numbers = #tpu.dot_dimension_numbers<[1], [0], [0], [1], [0, 0, 1, 1], [], []>} : vector<8x32xbf16>, vector<32x96xbf16>, vector<8x96xf32> -> vector<8x96xf32>
    %c0_18 = arith.constant 0 : index
    %c0_19 = arith.constant 0 : index
    %49 = vector.load %arg8[%c0_18, %c0_19] : memref<1x96xf32, #tpu.memory_space<vmem>>, vector<1x96xf32>
    %50 = vector.broadcast %49 : vector<1x96xf32> to vector<8x96xf32>
    %51 = arith.addf %48, %50 : vector<8x96xf32>
    %52 = vector.extract_strided_slice %51 {offsets = [0, 0], sizes = [8, 32], strides = [1, 1]} : vector<8x96xf32> to vector<8x32xf32>
    %53 = vector.extract_strided_slice %51 {offsets = [0, 32], sizes = [8, 32], strides = [1, 1]} : vector<8x96xf32> to vector<8x32xf32>
    %54 = vector.extract_strided_slice %51 {offsets = [0, 64], sizes = [8, 32], strides = [1, 1]} : vector<8x96xf32> to vector<8x32xf32>
    %cst_20 = arith.constant 0.353553385 : f32
    %55 = vector.broadcast %cst_20 : f32 to vector<8x32xf32>
    %56 = arith.mulf %52, %55 : vector<8x32xf32>
    %57 = arith.truncf %56 : vector<8x32xf32> to vector<8x32xbf16>
    %58 = arith.truncf %53 : vector<8x32xf32> to vector<8x32xbf16>
    %59 = arith.truncf %54 : vector<8x32xf32> to vector<8x32xbf16>
    %60 = vector.extract_strided_slice %57 {offsets = [0, 0], sizes = [8, 8], strides = [1, 1]} : vector<8x32xbf16> to vector<8x8xbf16>
    %61 = vector.extract_strided_slice %58 {offsets = [0, 0], sizes = [8, 8], strides = [1, 1]} : vector<8x32xbf16> to vector<8x8xbf16>
    %62 = vector.extract_strided_slice %59 {offsets = [0, 0], sizes = [8, 8], strides = [1, 1]} : vector<8x32xbf16> to vector<8x8xbf16>
    %cst_21 = arith.constant dense<0.000000e+00> : vector<8x8xf32>
    %63 = tpu.matmul %60, %61, %cst_21 {dimension_numbers = #tpu.dot_dimension_numbers<[1], [1], [0], [0], [0, 0, 1, 0], [], []>} : vector<8x8xbf16>, vector<8x8xbf16>, vector<8x8xf32> -> vector<8x8xf32>
    %64 = arith.addf %63, %12 : vector<8x8xf32>
    %cst_22 = arith.constant dense<0xFF800000> : vector<8xf32>
    %65 = vector.multi_reduction <maximumf>, %64, %cst_22 [1] : vector<8x8xf32> to vector<8xf32>
    %66 = vector.shape_cast %65 : vector<8xf32> to vector<8x1xf32>
    %67 = vector.broadcast %66 : vector<8x1xf32> to vector<8x8xf32>
    %68 = arith.subf %64, %67 : vector<8x8xf32>
    %69 = math.exp %68 : vector<8x8xf32>
    %cst_23 = arith.constant dense<0.000000e+00> : vector<8xf32>
    %70 = vector.multi_reduction <add>, %69, %cst_23 [1] : vector<8x8xf32> to vector<8xf32>
    %71 = vector.shape_cast %70 : vector<8xf32> to vector<8x1xf32>
    %72 = tpu.reciprocal %71 {approx = true} : vector<8x1xf32> -> vector<8x1xf32>
    %73 = vector.broadcast %72 : vector<8x1xf32> to vector<8x8xf32>
    %74 = arith.mulf %69, %73 : vector<8x8xf32>
    %75 = arith.truncf %74 : vector<8x8xf32> to vector<8x8xbf16>
    %cst_24 = arith.constant dense<0.000000e+00> : vector<8x8xf32>
    %76 = tpu.matmul %75, %62, %cst_24 {dimension_numbers = #tpu.dot_dimension_numbers<[1], [0], [0], [1], [0, 0, 1, 1], [], []>} : vector<8x8xbf16>, vector<8x8xbf16>, vector<8x8xf32> -> vector<8x8xf32>
    %77 = vector.extract_strided_slice %57 {offsets = [0, 8], sizes = [8, 8], strides = [1, 1]} : vector<8x32xbf16> to vector<8x8xbf16>
    %78 = vector.extract_strided_slice %58 {offsets = [0, 8], sizes = [8, 8], strides = [1, 1]} : vector<8x32xbf16> to vector<8x8xbf16>
    %79 = vector.extract_strided_slice %59 {offsets = [0, 8], sizes = [8, 8], strides = [1, 1]} : vector<8x32xbf16> to vector<8x8xbf16>
    %cst_25 = arith.constant dense<0.000000e+00> : vector<8x8xf32>
    %80 = tpu.matmul %77, %78, %cst_25 {dimension_numbers = #tpu.dot_dimension_numbers<[1], [1], [0], [0], [0, 0, 1, 0], [], []>} : vector<8x8xbf16>, vector<8x8xbf16>, vector<8x8xf32> -> vector<8x8xf32>
    %81 = arith.addf %80, %12 : vector<8x8xf32>
    %cst_26 = arith.constant dense<0xFF800000> : vector<8xf32>
    %82 = vector.multi_reduction <maximumf>, %81, %cst_26 [1] : vector<8x8xf32> to vector<8xf32>
    %83 = vector.shape_cast %82 : vector<8xf32> to vector<8x1xf32>
    %84 = vector.broadcast %83 : vector<8x1xf32> to vector<8x8xf32>
    %85 = arith.subf %81, %84 : vector<8x8xf32>
    %86 = math.exp %85 : vector<8x8xf32>
    %cst_27 = arith.constant dense<0.000000e+00> : vector<8xf32>
    %87 = vector.multi_reduction <add>, %86, %cst_27 [1] : vector<8x8xf32> to vector<8xf32>
    %88 = vector.shape_cast %87 : vector<8xf32> to vector<8x1xf32>
    %89 = tpu.reciprocal %88 {approx = true} : vector<8x1xf32> -> vector<8x1xf32>
    %90 = vector.broadcast %89 : vector<8x1xf32> to vector<8x8xf32>
    %91 = arith.mulf %86, %90 : vector<8x8xf32>
    %92 = arith.truncf %91 : vector<8x8xf32> to vector<8x8xbf16>
    %cst_28 = arith.constant dense<0.000000e+00> : vector<8x8xf32>
    %93 = tpu.matmul %92, %79, %cst_28 {dimension_numbers = #tpu.dot_dimension_numbers<[1], [0], [0], [1], [0, 0, 1, 1], [], []>} : vector<8x8xbf16>, vector<8x8xbf16>, vector<8x8xf32> -> vector<8x8xf32>
    %94 = vector.extract_strided_slice %57 {offsets = [0, 16], sizes = [8, 8], strides = [1, 1]} : vector<8x32xbf16> to vector<8x8xbf16>
    %95 = vector.extract_strided_slice %58 {offsets = [0, 16], sizes = [8, 8], strides = [1, 1]} : vector<8x32xbf16> to vector<8x8xbf16>
    %96 = vector.extract_strided_slice %59 {offsets = [0, 16], sizes = [8, 8], strides = [1, 1]} : vector<8x32xbf16> to vector<8x8xbf16>
    %cst_29 = arith.constant dense<0.000000e+00> : vector<8x8xf32>
    %97 = tpu.matmul %94, %95, %cst_29 {dimension_numbers = #tpu.dot_dimension_numbers<[1], [1], [0], [0], [0, 0, 1, 0], [], []>} : vector<8x8xbf16>, vector<8x8xbf16>, vector<8x8xf32> -> vector<8x8xf32>
    %98 = arith.addf %97, %12 : vector<8x8xf32>
    %cst_30 = arith.constant dense<0xFF800000> : vector<8xf32>
    %99 = vector.multi_reduction <maximumf>, %98, %cst_30 [1] : vector<8x8xf32> to vector<8xf32>
    %100 = vector.shape_cast %99 : vector<8xf32> to vector<8x1xf32>
    %101 = vector.broadcast %100 : vector<8x1xf32> to vector<8x8xf32>
    %102 = arith.subf %98, %101 : vector<8x8xf32>
    %103 = math.exp %102 : vector<8x8xf32>
    %cst_31 = arith.constant dense<0.000000e+00> : vector<8xf32>
    %104 = vector.multi_reduction <add>, %103, %cst_31 [1] : vector<8x8xf32> to vector<8xf32>
    %105 = vector.shape_cast %104 : vector<8xf32> to vector<8x1xf32>
    %106 = tpu.reciprocal %105 {approx = true} : vector<8x1xf32> -> vector<8x1xf32>
    %107 = vector.broadcast %106 : vector<8x1xf32> to vector<8x8xf32>
    %108 = arith.mulf %103, %107 : vector<8x8xf32>
    %109 = arith.truncf %108 : vector<8x8xf32> to vector<8x8xbf16>
    %cst_32 = arith.constant dense<0.000000e+00> : vector<8x8xf32>
    %110 = tpu.matmul %109, %96, %cst_32 {dimension_numbers = #tpu.dot_dimension_numbers<[1], [0], [0], [1], [0, 0, 1, 1], [], []>} : vector<8x8xbf16>, vector<8x8xbf16>, vector<8x8xf32> -> vector<8x8xf32>
    %111 = vector.extract_strided_slice %57 {offsets = [0, 24], sizes = [8, 8], strides = [1, 1]} : vector<8x32xbf16> to vector<8x8xbf16>
    %112 = vector.extract_strided_slice %58 {offsets = [0, 24], sizes = [8, 8], strides = [1, 1]} : vector<8x32xbf16> to vector<8x8xbf16>
    %113 = vector.extract_strided_slice %59 {offsets = [0, 24], sizes = [8, 8], strides = [1, 1]} : vector<8x32xbf16> to vector<8x8xbf16>
    %cst_33 = arith.constant dense<0.000000e+00> : vector<8x8xf32>
    %114 = tpu.matmul %111, %112, %cst_33 {dimension_numbers = #tpu.dot_dimension_numbers<[1], [1], [0], [0], [0, 0, 1, 0], [], []>} : vector<8x8xbf16>, vector<8x8xbf16>, vector<8x8xf32> -> vector<8x8xf32>
    %115 = arith.addf %114, %12 : vector<8x8xf32>
    %cst_34 = arith.constant dense<0xFF800000> : vector<8xf32>
    %116 = vector.multi_reduction <maximumf>, %115, %cst_34 [1] : vector<8x8xf32> to vector<8xf32>
    %117 = vector.shape_cast %116 : vector<8xf32> to vector<8x1xf32>
    %118 = vector.broadcast %117 : vector<8x1xf32> to vector<8x8xf32>
    %119 = arith.subf %115, %118 : vector<8x8xf32>
    %120 = math.exp %119 : vector<8x8xf32>
    %cst_35 = arith.constant dense<0.000000e+00> : vector<8xf32>
    %121 = vector.multi_reduction <add>, %120, %cst_35 [1] : vector<8x8xf32> to vector<8xf32>
    %122 = vector.shape_cast %121 : vector<8xf32> to vector<8x1xf32>
    %123 = tpu.reciprocal %122 {approx = true} : vector<8x1xf32> -> vector<8x1xf32>
    %124 = vector.broadcast %123 : vector<8x1xf32> to vector<8x8xf32>
    %125 = arith.mulf %120, %124 : vector<8x8xf32>
    %126 = arith.truncf %125 : vector<8x8xf32> to vector<8x8xbf16>
    %cst_36 = arith.constant dense<0.000000e+00> : vector<8x8xf32>
    %127 = tpu.matmul %126, %113, %cst_36 {dimension_numbers = #tpu.dot_dimension_numbers<[1], [0], [0], [1], [0, 0, 1, 1], [], []>} : vector<8x8xbf16>, vector<8x8xbf16>, vector<8x8xf32> -> vector<8x8xf32>
    %128 = tpu.concatenate %76, %93, %110, %127 in 1 : vector<8x8xf32>, vector<8x8xf32>, vector<8x8xf32>, vector<8x8xf32> -> vector<8x32xf32>
    %129 = arith.truncf %128 : vector<8x32xf32> to vector<8x32xbf16>
    %c0_37 = arith.constant 0 : index
    %c0_38 = arith.constant 0 : index
    %130 = vector.load %arg9[%c0_37, %c0_38] : memref<32x32xbf16, #tpu.memory_space<vmem>>, vector<32x32xbf16>
    %cst_39 = arith.constant dense<0.000000e+00> : vector<8x32xf32>
    %131 = tpu.matmul %129, %130, %cst_39 {dimension_numbers = #tpu.dot_dimension_numbers<[1], [0], [0], [1], [0, 0, 1, 1], [], []>} : vector<8x32xbf16>, vector<32x32xbf16>, vector<8x32xf32> -> vector<8x32xf32>
    %c0_40 = arith.constant 0 : index
    %c0_41 = arith.constant 0 : index
    %132 = vector.load %arg10[%c0_40, %c0_41] : memref<1x32xf32, #tpu.memory_space<vmem>>, vector<1x32xf32>
    %133 = vector.broadcast %132 : vector<1x32xf32> to vector<8x32xf32>
    %134 = arith.addf %131, %133 : vector<8x32xf32>
    %135 = arith.addf %19, %134 : vector<8x32xf32>
    %cst_42 = arith.constant dense<0.000000e+00> : vector<8xf32>
    %136 = vector.multi_reduction <add>, %135, %cst_42 [1] : vector<8x32xf32> to vector<8xf32>
    %137 = vector.shape_cast %136 : vector<8xf32> to vector<8x1xf32>
    %cst_43 = arith.constant 3.200000e+01 : f32
    %138 = vector.broadcast %cst_43 : f32 to vector<8x1xf32>
    %139 = arith.divf %137, %138 : vector<8x1xf32>
    %140 = arith.mulf %135, %135 : vector<8x32xf32>
    %cst_44 = arith.constant dense<0.000000e+00> : vector<8xf32>
    %141 = vector.multi_reduction <add>, %140, %cst_44 [1] : vector<8x32xf32> to vector<8xf32>
    %142 = vector.shape_cast %141 : vector<8xf32> to vector<8x1xf32>
    %cst_45 = arith.constant 3.200000e+01 : f32
    %143 = vector.broadcast %cst_45 : f32 to vector<8x1xf32>
    %144 = arith.divf %142, %143 : vector<8x1xf32>
    %145 = arith.mulf %139, %139 : vector<8x1xf32>
    %146 = arith.subf %144, %145 : vector<8x1xf32>
    %cst_46 = arith.constant 9.99999974E-6 : f32
    %147 = vector.broadcast %cst_46 : f32 to vector<8x1xf32>
    %148 = arith.addf %146, %147 : vector<8x1xf32>
    %149 = math.rsqrt %148 : vector<8x1xf32>
    %c0_47 = arith.constant 0 : index
    %c0_48 = arith.constant 0 : index
    %150 = vector.load %arg11[%c0_47, %c0_48] : memref<1x32xf32, #tpu.memory_space<vmem>>, vector<1x32xf32>
    %151 = vector.broadcast %149 : vector<8x1xf32> to vector<8x32xf32>
    %152 = vector.broadcast %150 : vector<1x32xf32> to vector<8x32xf32>
    %153 = arith.mulf %151, %152 : vector<8x32xf32>
    %154 = arith.mulf %135, %153 : vector<8x32xf32>
    %c0_49 = arith.constant 0 : index
    %c0_50 = arith.constant 0 : index
    %155 = vector.load %arg12[%c0_49, %c0_50] : memref<1x32xf32, #tpu.memory_space<vmem>>, vector<1x32xf32>
    %156 = vector.broadcast %139 : vector<8x1xf32> to vector<8x32xf32>
    %157 = arith.mulf %156, %153 : vector<8x32xf32>
    %158 = vector.broadcast %155 : vector<1x32xf32> to vector<8x32xf32>
    %159 = arith.subf %158, %157 : vector<8x32xf32>
    %160 = arith.addf %154, %159 : vector<8x32xf32>
    %161 = arith.truncf %160 : vector<8x32xf32> to vector<8x32xbf16>
    %c0_51 = arith.constant 0 : index
    %c0_52 = arith.constant 0 : index
    %162 = vector.load %arg13[%c0_51, %c0_52] : memref<32x32xbf16, #tpu.memory_space<vmem>>, vector<32x32xbf16>
    %cst_53 = arith.constant dense<0.000000e+00> : vector<8x32xf32>
    %163 = tpu.matmul %161, %162, %cst_53 {dimension_numbers = #tpu.dot_dimension_numbers<[1], [0], [0], [1], [0, 0, 1, 1], [], []>} : vector<8x32xbf16>, vector<32x32xbf16>, vector<8x32xf32> -> vector<8x32xf32>
    %c0_54 = arith.constant 0 : index
    %c0_55 = arith.constant 0 : index
    %164 = vector.load %arg14[%c0_54, %c0_55] : memref<1x32xf32, #tpu.memory_space<vmem>>, vector<1x32xf32>
    %165 = vector.broadcast %164 : vector<1x32xf32> to vector<8x32xf32>
    %166 = arith.addf %163, %165 : vector<8x32xf32>
    %167 = arith.truncf %20 : vector<8x32xf32> to vector<8x32xbf16>
    %c0_56 = arith.constant 0 : index
    %c0_57 = arith.constant 0 : index
    %168 = vector.load %arg15[%c0_56, %c0_57] : memref<32x64xbf16, #tpu.memory_space<vmem>>, vector<32x64xbf16>
    %cst_58 = arith.constant dense<0.000000e+00> : vector<8x64xf32>
    %169 = tpu.matmul %167, %168, %cst_58 {dimension_numbers = #tpu.dot_dimension_numbers<[1], [0], [0], [1], [0, 0, 1, 1], [], []>} : vector<8x32xbf16>, vector<32x64xbf16>, vector<8x64xf32> -> vector<8x64xf32>
    %c0_59 = arith.constant 0 : index
    %c0_60 = arith.constant 0 : index
    %170 = vector.load %arg16[%c0_59, %c0_60] : memref<1x64xf32, #tpu.memory_space<vmem>>, vector<1x64xf32>
    %171 = vector.broadcast %170 : vector<1x64xf32> to vector<8x64xf32>
    %172 = arith.addf %169, %171 : vector<8x64xf32>
    %173 = vector.extract_strided_slice %172 {offsets = [0, 0], sizes = [8, 32], strides = [1, 1]} : vector<8x64xf32> to vector<8x32xf32>
    %174 = vector.extract_strided_slice %172 {offsets = [0, 32], sizes = [8, 32], strides = [1, 1]} : vector<8x64xf32> to vector<8x32xf32>
    %cst_61 = arith.constant 0.353553385 : f32
    %175 = vector.broadcast %cst_61 : f32 to vector<8x32xf32>
    %176 = arith.mulf %166, %175 : vector<8x32xf32>
    %177 = arith.truncf %176 : vector<8x32xf32> to vector<8x32xbf16>
    %178 = arith.truncf %173 : vector<8x32xf32> to vector<8x32xbf16>
    %179 = arith.truncf %174 : vector<8x32xf32> to vector<8x32xbf16>
    %180 = vector.extract_strided_slice %177 {offsets = [0, 0], sizes = [8, 8], strides = [1, 1]} : vector<8x32xbf16> to vector<8x8xbf16>
    %181 = vector.extract_strided_slice %178 {offsets = [0, 0], sizes = [8, 8], strides = [1, 1]} : vector<8x32xbf16> to vector<8x8xbf16>
    %182 = vector.extract_strided_slice %179 {offsets = [0, 0], sizes = [8, 8], strides = [1, 1]} : vector<8x32xbf16> to vector<8x8xbf16>
    %cst_62 = arith.constant dense<0.000000e+00> : vector<8x8xf32>
    %183 = tpu.matmul %180, %181, %cst_62 {dimension_numbers = #tpu.dot_dimension_numbers<[1], [1], [0], [0], [0, 0, 1, 0], [], []>} : vector<8x8xbf16>, vector<8x8xbf16>, vector<8x8xf32> -> vector<8x8xf32>
    %184 = arith.addf %183, %18 : vector<8x8xf32>
    %cst_63 = arith.constant dense<0xFF800000> : vector<8xf32>
    %185 = vector.multi_reduction <maximumf>, %184, %cst_63 [1] : vector<8x8xf32> to vector<8xf32>
    %186 = vector.shape_cast %185 : vector<8xf32> to vector<8x1xf32>
    %187 = vector.broadcast %186 : vector<8x1xf32> to vector<8x8xf32>
    %188 = arith.subf %184, %187 : vector<8x8xf32>
    %189 = math.exp %188 : vector<8x8xf32>
    %cst_64 = arith.constant dense<0.000000e+00> : vector<8xf32>
    %190 = vector.multi_reduction <add>, %189, %cst_64 [1] : vector<8x8xf32> to vector<8xf32>
    %191 = vector.shape_cast %190 : vector<8xf32> to vector<8x1xf32>
    %192 = tpu.reciprocal %191 {approx = true} : vector<8x1xf32> -> vector<8x1xf32>
    %193 = vector.broadcast %192 : vector<8x1xf32> to vector<8x8xf32>
    %194 = arith.mulf %189, %193 : vector<8x8xf32>
    %195 = arith.truncf %194 : vector<8x8xf32> to vector<8x8xbf16>
    %cst_65 = arith.constant dense<0.000000e+00> : vector<8x8xf32>
    %196 = tpu.matmul %195, %182, %cst_65 {dimension_numbers = #tpu.dot_dimension_numbers<[1], [0], [0], [1], [0, 0, 1, 1], [], []>} : vector<8x8xbf16>, vector<8x8xbf16>, vector<8x8xf32> -> vector<8x8xf32>
    %197 = vector.extract_strided_slice %177 {offsets = [0, 8], sizes = [8, 8], strides = [1, 1]} : vector<8x32xbf16> to vector<8x8xbf16>
    %198 = vector.extract_strided_slice %178 {offsets = [0, 8], sizes = [8, 8], strides = [1, 1]} : vector<8x32xbf16> to vector<8x8xbf16>
    %199 = vector.extract_strided_slice %179 {offsets = [0, 8], sizes = [8, 8], strides = [1, 1]} : vector<8x32xbf16> to vector<8x8xbf16>
    %cst_66 = arith.constant dense<0.000000e+00> : vector<8x8xf32>
    %200 = tpu.matmul %197, %198, %cst_66 {dimension_numbers = #tpu.dot_dimension_numbers<[1], [1], [0], [0], [0, 0, 1, 0], [], []>} : vector<8x8xbf16>, vector<8x8xbf16>, vector<8x8xf32> -> vector<8x8xf32>
    %201 = arith.addf %200, %18 : vector<8x8xf32>
    %cst_67 = arith.constant dense<0xFF800000> : vector<8xf32>
    %202 = vector.multi_reduction <maximumf>, %201, %cst_67 [1] : vector<8x8xf32> to vector<8xf32>
    %203 = vector.shape_cast %202 : vector<8xf32> to vector<8x1xf32>
    %204 = vector.broadcast %203 : vector<8x1xf32> to vector<8x8xf32>
    %205 = arith.subf %201, %204 : vector<8x8xf32>
    %206 = math.exp %205 : vector<8x8xf32>
    %cst_68 = arith.constant dense<0.000000e+00> : vector<8xf32>
    %207 = vector.multi_reduction <add>, %206, %cst_68 [1] : vector<8x8xf32> to vector<8xf32>
    %208 = vector.shape_cast %207 : vector<8xf32> to vector<8x1xf32>
    %209 = tpu.reciprocal %208 {approx = true} : vector<8x1xf32> -> vector<8x1xf32>
    %210 = vector.broadcast %209 : vector<8x1xf32> to vector<8x8xf32>
    %211 = arith.mulf %206, %210 : vector<8x8xf32>
    %212 = arith.truncf %211 : vector<8x8xf32> to vector<8x8xbf16>
    %cst_69 = arith.constant dense<0.000000e+00> : vector<8x8xf32>
    %213 = tpu.matmul %212, %199, %cst_69 {dimension_numbers = #tpu.dot_dimension_numbers<[1], [0], [0], [1], [0, 0, 1, 1], [], []>} : vector<8x8xbf16>, vector<8x8xbf16>, vector<8x8xf32> -> vector<8x8xf32>
    %214 = vector.extract_strided_slice %177 {offsets = [0, 16], sizes = [8, 8], strides = [1, 1]} : vector<8x32xbf16> to vector<8x8xbf16>
    %215 = vector.extract_strided_slice %178 {offsets = [0, 16], sizes = [8, 8], strides = [1, 1]} : vector<8x32xbf16> to vector<8x8xbf16>
    %216 = vector.extract_strided_slice %179 {offsets = [0, 16], sizes = [8, 8], strides = [1, 1]} : vector<8x32xbf16> to vector<8x8xbf16>
    %cst_70 = arith.constant dense<0.000000e+00> : vector<8x8xf32>
    %217 = tpu.matmul %214, %215, %cst_70 {dimension_numbers = #tpu.dot_dimension_numbers<[1], [1], [0], [0], [0, 0, 1, 0], [], []>} : vector<8x8xbf16>, vector<8x8xbf16>, vector<8x8xf32> -> vector<8x8xf32>
    %218 = arith.addf %217, %18 : vector<8x8xf32>
    %cst_71 = arith.constant dense<0xFF800000> : vector<8xf32>
    %219 = vector.multi_reduction <maximumf>, %218, %cst_71 [1] : vector<8x8xf32> to vector<8xf32>
    %220 = vector.shape_cast %219 : vector<8xf32> to vector<8x1xf32>
    %221 = vector.broadcast %220 : vector<8x1xf32> to vector<8x8xf32>
    %222 = arith.subf %218, %221 : vector<8x8xf32>
    %223 = math.exp %222 : vector<8x8xf32>
    %cst_72 = arith.constant dense<0.000000e+00> : vector<8xf32>
    %224 = vector.multi_reduction <add>, %223, %cst_72 [1] : vector<8x8xf32> to vector<8xf32>
    %225 = vector.shape_cast %224 : vector<8xf32> to vector<8x1xf32>
    %226 = tpu.reciprocal %225 {approx = true} : vector<8x1xf32> -> vector<8x1xf32>
    %227 = vector.broadcast %226 : vector<8x1xf32> to vector<8x8xf32>
    %228 = arith.mulf %223, %227 : vector<8x8xf32>
    %229 = arith.truncf %228 : vector<8x8xf32> to vector<8x8xbf16>
    %cst_73 = arith.constant dense<0.000000e+00> : vector<8x8xf32>
    %230 = tpu.matmul %229, %216, %cst_73 {dimension_numbers = #tpu.dot_dimension_numbers<[1], [0], [0], [1], [0, 0, 1, 1], [], []>} : vector<8x8xbf16>, vector<8x8xbf16>, vector<8x8xf32> -> vector<8x8xf32>
    %231 = vector.extract_strided_slice %177 {offsets = [0, 24], sizes = [8, 8], strides = [1, 1]} : vector<8x32xbf16> to vector<8x8xbf16>
    %232 = vector.extract_strided_slice %178 {offsets = [0, 24], sizes = [8, 8], strides = [1, 1]} : vector<8x32xbf16> to vector<8x8xbf16>
    %233 = vector.extract_strided_slice %179 {offsets = [0, 24], sizes = [8, 8], strides = [1, 1]} : vector<8x32xbf16> to vector<8x8xbf16>
    %cst_74 = arith.constant dense<0.000000e+00> : vector<8x8xf32>
    %234 = tpu.matmul %231, %232, %cst_74 {dimension_numbers = #tpu.dot_dimension_numbers<[1], [1], [0], [0], [0, 0, 1, 0], [], []>} : vector<8x8xbf16>, vector<8x8xbf16>, vector<8x8xf32> -> vector<8x8xf32>
    %235 = arith.addf %234, %18 : vector<8x8xf32>
    %cst_75 = arith.constant dense<0xFF800000> : vector<8xf32>
    %236 = vector.multi_reduction <maximumf>, %235, %cst_75 [1] : vector<8x8xf32> to vector<8xf32>
    %237 = vector.shape_cast %236 : vector<8xf32> to vector<8x1xf32>
    %238 = vector.broadcast %237 : vector<8x1xf32> to vector<8x8xf32>
    %239 = arith.subf %235, %238 : vector<8x8xf32>
    %240 = math.exp %239 : vector<8x8xf32>
    %cst_76 = arith.constant dense<0.000000e+00> : vector<8xf32>
    %241 = vector.multi_reduction <add>, %240, %cst_76 [1] : vector<8x8xf32> to vector<8xf32>
    %242 = vector.shape_cast %241 : vector<8xf32> to vector<8x1xf32>
    %243 = tpu.reciprocal %242 {approx = true} : vector<8x1xf32> -> vector<8x1xf32>
    %244 = vector.broadcast %243 : vector<8x1xf32> to vector<8x8xf32>
    %245 = arith.mulf %240, %244 : vector<8x8xf32>
    %246 = arith.truncf %245 : vector<8x8xf32> to vector<8x8xbf16>
    %cst_77 = arith.constant dense<0.000000e+00> : vector<8x8xf32>
    %247 = tpu.matmul %246, %233, %cst_77 {dimension_numbers = #tpu.dot_dimension_numbers<[1], [0], [0], [1], [0, 0, 1, 1], [], []>} : vector<8x8xbf16>, vector<8x8xbf16>, vector<8x8xf32> -> vector<8x8xf32>
    %248 = tpu.concatenate %196, %213, %230, %247 in 1 : vector<8x8xf32>, vector<8x8xf32>, vector<8x8xf32>, vector<8x8xf32> -> vector<8x32xf32>
    %249 = arith.truncf %248 : vector<8x32xf32> to vector<8x32xbf16>
    %c0_78 = arith.constant 0 : index
    %c0_79 = arith.constant 0 : index
    %250 = vector.load %arg17[%c0_78, %c0_79] : memref<32x32xbf16, #tpu.memory_space<vmem>>, vector<32x32xbf16>
    %cst_80 = arith.constant dense<0.000000e+00> : vector<8x32xf32>
    %251 = tpu.matmul %249, %250, %cst_80 {dimension_numbers = #tpu.dot_dimension_numbers<[1], [0], [0], [1], [0, 0, 1, 1], [], []>} : vector<8x32xbf16>, vector<32x32xbf16>, vector<8x32xf32> -> vector<8x32xf32>
    %c0_81 = arith.constant 0 : index
    %c0_82 = arith.constant 0 : index
    %252 = vector.load %arg18[%c0_81, %c0_82] : memref<1x32xf32, #tpu.memory_space<vmem>>, vector<1x32xf32>
    %253 = vector.broadcast %252 : vector<1x32xf32> to vector<8x32xf32>
    %254 = arith.addf %251, %253 : vector<8x32xf32>
    %255 = arith.addf %135, %254 : vector<8x32xf32>
    %cst_83 = arith.constant dense<0.000000e+00> : vector<8xf32>
    %256 = vector.multi_reduction <add>, %255, %cst_83 [1] : vector<8x32xf32> to vector<8xf32>
    %257 = vector.shape_cast %256 : vector<8xf32> to vector<8x1xf32>
    %cst_84 = arith.constant 3.200000e+01 : f32
    %258 = vector.broadcast %cst_84 : f32 to vector<8x1xf32>
    %259 = arith.divf %257, %258 : vector<8x1xf32>
    %260 = arith.mulf %255, %255 : vector<8x32xf32>
    %cst_85 = arith.constant dense<0.000000e+00> : vector<8xf32>
    %261 = vector.multi_reduction <add>, %260, %cst_85 [1] : vector<8x32xf32> to vector<8xf32>
    %262 = vector.shape_cast %261 : vector<8xf32> to vector<8x1xf32>
    %cst_86 = arith.constant 3.200000e+01 : f32
    %263 = vector.broadcast %cst_86 : f32 to vector<8x1xf32>
    %264 = arith.divf %262, %263 : vector<8x1xf32>
    %265 = arith.mulf %259, %259 : vector<8x1xf32>
    %266 = arith.subf %264, %265 : vector<8x1xf32>
    %cst_87 = arith.constant 9.99999974E-6 : f32
    %267 = vector.broadcast %cst_87 : f32 to vector<8x1xf32>
    %268 = arith.addf %266, %267 : vector<8x1xf32>
    %269 = math.rsqrt %268 : vector<8x1xf32>
    %c0_88 = arith.constant 0 : index
    %c0_89 = arith.constant 0 : index
    %270 = vector.load %arg19[%c0_88, %c0_89] : memref<1x32xf32, #tpu.memory_space<vmem>>, vector<1x32xf32>
    %271 = vector.broadcast %269 : vector<8x1xf32> to vector<8x32xf32>
    %272 = vector.broadcast %270 : vector<1x32xf32> to vector<8x32xf32>
    %273 = arith.mulf %271, %272 : vector<8x32xf32>
    %274 = arith.mulf %255, %273 : vector<8x32xf32>
    %c0_90 = arith.constant 0 : index
    %c0_91 = arith.constant 0 : index
    %275 = vector.load %arg20[%c0_90, %c0_91] : memref<1x32xf32, #tpu.memory_space<vmem>>, vector<1x32xf32>
    %276 = vector.broadcast %259 : vector<8x1xf32> to vector<8x32xf32>
    %277 = arith.mulf %276, %273 : vector<8x32xf32>
    %278 = vector.broadcast %275 : vector<1x32xf32> to vector<8x32xf32>
    %279 = arith.subf %278, %277 : vector<8x32xf32>
    %280 = arith.addf %274, %279 : vector<8x32xf32>
    %281 = arith.truncf %280 : vector<8x32xf32> to vector<8x32xbf16>
    %c0_92 = arith.constant 0 : index
    %c0_93 = arith.constant 0 : index
    %282 = vector.load %arg21[%c0_92, %c0_93] : memref<32x64xbf16, #tpu.memory_space<vmem>>, vector<32x64xbf16>
    %cst_94 = arith.constant dense<0.000000e+00> : vector<8x64xf32>
    %283 = tpu.matmul %281, %282, %cst_94 {dimension_numbers = #tpu.dot_dimension_numbers<[1], [0], [0], [1], [0, 0, 1, 1], [], []>} : vector<8x32xbf16>, vector<32x64xbf16>, vector<8x64xf32> -> vector<8x64xf32>
    %c0_95 = arith.constant 0 : index
    %c0_96 = arith.constant 0 : index
    %284 = vector.load %arg22[%c0_95, %c0_96] : memref<1x64xf32, #tpu.memory_space<vmem>>, vector<1x64xf32>
    %285 = vector.broadcast %284 : vector<1x64xf32> to vector<8x64xf32>
    %286 = arith.addf %283, %285 : vector<8x64xf32>
    %cst_97 = arith.constant 0.000000e+00 : f32
    %287 = vector.broadcast %cst_97 : f32 to vector<8x64xf32>
    %288 = arith.maximumf %286, %287 : vector<8x64xf32>
    %289 = arith.truncf %288 : vector<8x64xf32> to vector<8x64xbf16>
    %c0_98 = arith.constant 0 : index
    %c0_99 = arith.constant 0 : index
    %290 = vector.load %arg23[%c0_98, %c0_99] : memref<64x32xbf16, #tpu.memory_space<vmem>>, vector<64x32xbf16>
    %cst_100 = arith.constant dense<0.000000e+00> : vector<8x32xf32>
    %291 = tpu.matmul %289, %290, %cst_100 {dimension_numbers = #tpu.dot_dimension_numbers<[1], [0], [0], [1], [0, 0, 1, 1], [], []>} : vector<8x64xbf16>, vector<64x32xbf16>, vector<8x32xf32> -> vector<8x32xf32>
    %c0_101 = arith.constant 0 : index
    %c0_102 = arith.constant 0 : index
    %292 = vector.load %arg24[%c0_101, %c0_102] : memref<1x32xf32, #tpu.memory_space<vmem>>, vector<1x32xf32>
    %293 = vector.broadcast %292 : vector<1x32xf32> to vector<8x32xf32>
    %294 = arith.addf %291, %293 : vector<8x32xf32>
    %295 = arith.addf %255, %294 : vector<8x32xf32>
    %c0_103 = arith.constant 0 : index
    %c0_104 = arith.constant 0 : index
    %296 = vector.load %arg25[%c0_103, %c0_104] : memref<8x32xf32, #tpu.memory_space<vmem>>, vector<8x32xf32>
    tpu.vector_store %arg25[%c0_103, %c0_104], %295 {strides = array<i32>} : memref<8x32xf32, #tpu.memory_space<vmem>>, vector<8x32xf32>,
    return
  }
  func.func @transform_0(%arg0: i32, %arg1: memref<2xi32, #tpu.memory_space<smem>>, %arg2: memref<2xi32, #tpu.memory_space<smem>>) -> (i32, i32) {
    %c0_i32 = arith.constant 0 : i32
    %c0_i32_0 = arith.constant 0 : i32
    return %arg0, %c0_i32 : i32, i32
  }
  func.func @transform_1(%arg0: i32, %arg1: memref<2xi32, #tpu.memory_space<smem>>, %arg2: memref<2xi32, #tpu.memory_space<smem>>) -> (i32, i32) {
    %c0_i32 = arith.constant 0 : i32
    %c0_i32_0 = arith.constant 0 : i32
    return %arg0, %c0_i32 : i32, i32
  }
  func.func @transform_2(%arg0: i32, %arg1: memref<2xi32, #tpu.memory_space<smem>>, %arg2: memref<2xi32, #tpu.memory_space<smem>>) -> (i32, i32) {
    %c0_i32 = arith.constant 0 : i32
    %c0_i32_0 = arith.constant 0 : i32
    %c0_i32_1 = arith.constant 0 : i32
    return %c0_i32, %c0_i32_0 : i32, i32
  }
  func.func @transform_3(%arg0: i32, %arg1: memref<2xi32, #tpu.memory_space<smem>>, %arg2: memref<2xi32, #tpu.memory_space<smem>>) -> (i32, i32) {
    %c0_i32 = arith.constant 0 : i32
    %c0_i32_0 = arith.constant 0 : i32
    %c0_i32_1 = arith.constant 0 : i32
    return %c0_i32, %c0_i32_0 : i32, i32
  }
  func.func @transform_4(%arg0: i32, %arg1: memref<2xi32, #tpu.memory_space<smem>>, %arg2: memref<2xi32, #tpu.memory_space<smem>>) -> (i32, i32) {
    %c0_i32 = arith.constant 0 : i32
    %c0_i32_0 = arith.constant 0 : i32
    %c0_i32_1 = arith.constant 0 : i32
    return %c0_i32, %c0_i32_0 : i32, i32
  }
  func.func @transform_5(%arg0: i32, %arg1: memref<2xi32, #tpu.memory_space<smem>>, %arg2: memref<2xi32, #tpu.memory_space<smem>>) -> (i32, i32) {
    %c0_i32 = arith.constant 0 : i32
    %c0_i32_0 = arith.constant 0 : i32
    %c0_i32_1 = arith.constant 0 : i32
    return %c0_i32, %c0_i32_0 : i32, i32
  }
  func.func @transform_6(%arg0: i32, %arg1: memref<2xi32, #tpu.memory_space<smem>>, %arg2: memref<2xi32, #tpu.memory_space<smem>>) -> (i32, i32) {
    %c0_i32 = arith.constant 0 : i32
    %c0_i32_0 = arith.constant 0 : i32
    %c0_i32_1 = arith.constant 0 : i32
    return %c0_i32, %c0_i32_0 : i32, i32
  }
  func.func @transform_7(%arg0: i32, %arg1: memref<2xi32, #tpu.memory_space<smem>>, %arg2: memref<2xi32, #tpu.memory_space<smem>>) -> (i32, i32) {
    %c0_i32 = arith.constant 0 : i32
    %c0_i32_0 = arith.constant 0 : i32
    %c0_i32_1 = arith.constant 0 : i32
    return %c0_i32, %c0_i32_0 : i32, i32
  }
  func.func @transform_8(%arg0: i32, %arg1: memref<2xi32, #tpu.memory_space<smem>>, %arg2: memref<2xi32, #tpu.memory_space<smem>>) -> (i32, i32) {
    %c0_i32 = arith.constant 0 : i32
    %c0_i32_0 = arith.constant 0 : i32
    %c0_i32_1 = arith.constant 0 : i32
    return %c0_i32, %c0_i32_0 : i32, i32
  }
  func.func @transform_9(%arg0: i32, %arg1: memref<2xi32, #tpu.memory_space<smem>>, %arg2: memref<2xi32, #tpu.memory_space<smem>>) -> (i32, i32) {
    %c0_i32 = arith.constant 0 : i32
    %c0_i32_0 = arith.constant 0 : i32
    %c0_i32_1 = arith.constant 0 : i32
    return %c0_i32, %c0_i32_0 : i32, i32
  }
  func.func @transform_10(%arg0: i32, %arg1: memref<2xi32, #tpu.memory_space<smem>>, %arg2: memref<2xi32, #tpu.memory_space<smem>>) -> (i32, i32) {
    %c0_i32 = arith.constant 0 : i32
    %c0_i32_0 = arith.constant 0 : i32
    %c0_i32_1 = arith.constant 0 : i32
    return %c0_i32, %c0_i32_0 : i32, i32
  }
  func.func @transform_11(%arg0: i32, %arg1: memref<2xi32, #tpu.memory_space<smem>>, %arg2: memref<2xi32, #tpu.memory_space<smem>>) -> (i32, i32) {
    %c0_i32 = arith.constant 0 : i32
    %c0_i32_0 = arith.constant 0 : i32
    %c0_i32_1 = arith.constant 0 : i32
    return %c0_i32, %c0_i32_0 : i32, i32
  }
  func.func @transform_12(%arg0: i32, %arg1: memref<2xi32, #tpu.memory_space<smem>>, %arg2: memref<2xi32, #tpu.memory_space<smem>>) -> (i32, i32) {
    %c0_i32 = arith.constant 0 : i32
    %c0_i32_0 = arith.constant 0 : i32
    %c0_i32_1 = arith.constant 0 : i32
    return %c0_i32, %c0_i32_0 : i32, i32
  }
  func.func @transform_13(%arg0: i32, %arg1: memref<2xi32, #tpu.memory_space<smem>>, %arg2: memref<2xi32, #tpu.memory_space<smem>>) -> (i32, i32) {
    %c0_i32 = arith.constant 0 : i32
    %c0_i32_0 = arith.constant 0 : i32
    %c0_i32_1 = arith.constant 0 : i32
    return %c0_i32, %c0_i32_0 : i32, i32
  }
  func.func @transform_14(%arg0: i32, %arg1: memref<2xi32, #tpu.memory_space<smem>>, %arg2: memref<2xi32, #tpu.memory_space<smem>>) -> (i32, i32) {
    %c0_i32 = arith.constant 0 : i32
    %c0_i32_0 = arith.constant 0 : i32
    %c0_i32_1 = arith.constant 0 : i32
    return %c0_i32, %c0_i32_0 : i32, i32
  }
  func.func @transform_15(%arg0: i32, %arg1: memref<2xi32, #tpu.memory_space<smem>>, %arg2: memref<2xi32, #tpu.memory_space<smem>>) -> (i32, i32) {
    %c0_i32 = arith.constant 0 : i32
    %c0_i32_0 = arith.constant 0 : i32
    %c0_i32_1 = arith.constant 0 : i32
    return %c0_i32, %c0_i32_0 : i32, i32
  }
  func.func @transform_16(%arg0: i32, %arg1: memref<2xi32, #tpu.memory_space<smem>>, %arg2: memref<2xi32, #tpu.memory_space<smem>>) -> (i32, i32) {
    %c0_i32 = arith.constant 0 : i32
    %c0_i32_0 = arith.constant 0 : i32
    %c0_i32_1 = arith.constant 0 : i32
    return %c0_i32, %c0_i32_0 : i32, i32
  }
  func.func @transform_17(%arg0: i32, %arg1: memref<2xi32, #tpu.memory_space<smem>>, %arg2: memref<2xi32, #tpu.memory_space<smem>>) -> (i32, i32) {
    %c0_i32 = arith.constant 0 : i32
    %c0_i32_0 = arith.constant 0 : i32
    %c0_i32_1 = arith.constant 0 : i32
    return %c0_i32, %c0_i32_0 : i32, i32
  }
  func.func @transform_18(%arg0: i32, %arg1: memref<2xi32, #tpu.memory_space<smem>>, %arg2: memref<2xi32, #tpu.memory_space<smem>>) -> (i32, i32) {
    %c0_i32 = arith.constant 0 : i32
    %c0_i32_0 = arith.constant 0 : i32
    %c0_i32_1 = arith.constant 0 : i32
    return %c0_i32, %c0_i32_0 : i32, i32
  }
  func.func @transform_19(%arg0: i32, %arg1: memref<2xi32, #tpu.memory_space<smem>>, %arg2: memref<2xi32, #tpu.memory_space<smem>>) -> (i32, i32) {
    %c0_i32 = arith.constant 0 : i32
    %c0_i32_0 = arith.constant 0 : i32
    %c0_i32_1 = arith.constant 0 : i32
    return %c0_i32, %c0_i32_0 : i32, i32
  }
  func.func @transform_20(%arg0: i32, %arg1: memref<2xi32, #tpu.memory_space<smem>>, %arg2: memref<2xi32, #tpu.memory_space<smem>>) -> (i32, i32) {
    %c0_i32 = arith.constant 0 : i32
    %c0_i32_0 = arith.constant 0 : i32
    %c0_i32_1 = arith.constant 0 : i32
    return %c0_i32, %c0_i32_0 : i32, i32
  }
  func.func @transform_21(%arg0: i32, %arg1: memref<2xi32, #tpu.memory_space<smem>>, %arg2: memref<2xi32, #tpu.memory_space<smem>>) -> (i32, i32) {
    %c0_i32 = arith.constant 0 : i32
    %c0_i32_0 = arith.constant 0 : i32
    %c0_i32_1 = arith.constant 0 : i32
    return %c0_i32, %c0_i32_0 : i32, i32
  }
  func.func @transform_22(%arg0: i32, %arg1: memref<2xi32, #tpu.memory_space<smem>>, %arg2: memref<2xi32, #tpu.memory_space<smem>>) -> (i32, i32) {
    %c0_i32 = arith.constant 0 : i32
    %c0_i32_0 = arith.constant 0 : i32
    return %arg0, %c0_i32 : i32, i32
  }
}

</mosaic_0001>

<bundles_post_ra>
// kernel: tpu_custom_call.1
= control target key start
LH: loop header
LB: loop body
LE: loop exit
PB: predicated region body
PF: predicated region fallthrough
CT: control target
= control target key end

     0   :  { %s2854_s29 = smov [#allocation3]   ;;  %s3413_s0 = inlined_call_operand.hbm [shape: s32[2], index: 0, kind: input, shape index: {}]   ;;  %s3414_s2 = inlined_call_operand.vmem [shape: f32[16,32], index: 2, kind: input, shape index: {}]   ;;  %s3415_s3 = inlined_call_operand.vmem [shape: f32[16,32], index: 3, kind: input, shape index: {}]   ;;  %s3416_s4 = inlined_call_operand.vmem [shape: f32[1,32], index: 4, kind: input, shape index: {}]   ;;  %s3417_s5 = inlined_call_operand.vmem [shape: f32[1,32], index: 5, kind: input, shape index: {}]   ;;  %s3418_s6 = inlined_call_operand.vmem [shape: bf16[32,96], index: 6, kind: input, shape index: {}]   ;;  %s3419_s7 = inlined_call_operand.vmem [shape: f32[1,96], index: 7, kind: input, shape index: {}]   ;;  %s3420_s8 = inlined_call_operand.hbm [shape: bf16[32,32], index: 8, kind: input, shape index: {}]   ;;  %s3421_s9 = inlined_call_operand.vmem [shape: f32[1,32], index: 9, kind: input, shape index: {}]   ;;  %s3422_s10 = inlined_call_operand.vmem [shape: f32[1,32], index: 10, kind: input, shape index: {}]   ;;  %s3423_s11 = inlined_call_operand.hbm [shape: f32[1,32], index: 11, kind: input, shape index: {}]   ;;  %s3424_s12 = inlined_call_operand.hbm [shape: bf16[32,32], index: 12, kind: input, shape index: {}]   ;;  %s3425_s13 = inlined_call_operand.hbm [shape: f32[1,32], index: 13, kind: input, shape index: {}]   ;;  %s3426_s14 = inlined_call_operand.hbm [shape: bf16[32,64], index: 14, kind: input, shape index: {}]   ;;  %s3427_s15 = inlined_call_operand.hbm [shape: f32[1,64], index: 15, kind: input, shape index: {}]   ;;  %s3428_s16 = inlined_call_operand.hbm [shape: bf16[32,32], index: 16, kind: input, shape index: {}]   ;;  %s3429_s17 = inlined_call_operand.hbm [shape: f32[1,32], index: 17, kind: input, shape index: {}]   ;;  %s3430_s18 = inlined_call_operand.hbm [shape: f32[1,32], index: 18, kind: input, shape index: {}]   ;;  %s3431_s19 = inlined_call_operand.hbm [shape: f32[1,32], index: 19, kind: input, shape index: {}]   ;;  %s3432_s20 = inlined_call_operand.hbm [shape: bf16[32,64], index: 20, kind: input, shape index: {}]   ;;  %s3433_s21 = inlined_call_operand.hbm [shape: f32[1,64], index: 21, kind: input, shape index: {}]   ;;  %s3434_s22 = inlined_call_operand.vmem [shape: bf16[64,32], index: 22, kind: input, shape index: {}]   ;;  %s3435_s23 = inlined_call_operand.vmem [shape: f32[1,32], index: 23, kind: input, shape index: {}]   ;;  %s3436_s24 = inlined_call_operand.hbm [shape: f32[16,32], index: 24, kind: output, shape index: {}]   ;;  %s3437_s1 = inlined_call_operand.hbm [shape: s32[2], index: 1, kind: input, shape index: {}]  }
   0x1   :  { %3447 = sst [smem:[#allocation40_spill]] %s3413_s0  ;;  %s2855_s0 = smov [#allocation4]  }
   0x2   :  { %3448 = sst [smem:[#allocation41_spill]] %s3414_s2 }
   0x3   :  { %3449 = sst [smem:[#allocation42_spill]] %s3415_s3  ;;  %s35_s3 = sshll.u32 %s3437_s1, 4  ;;  %s36_s3 = int_to_ptr.hbm [resolvable:$true] %s35_s3 }
   0x4   :  { %3450 = sst [smem:[#allocation43_spill]] %s3416_s4 }
   0x5   :  { %3451 = sst [smem:[#allocation44_spill]] %s3417_s5 }
   0x6   :  { %3452 = sst [smem:[#allocation45_spill]] %s3418_s6 }
   0x7   :  { %3453 = sst [smem:[#allocation46_spill]] %s3419_s7 }
   0x8   :  { %3454 = sst [smem:[#allocation47_spill]] %s3420_s8 }
   0x9   :  { %3455 = sst [smem:[#allocation48_spill]] %s3421_s9 }
   0xa   :  { %3456 = sst [smem:[#allocation49_spill]] %s3422_s10 }
   0xb   :  { %3457 = sst [smem:[#allocation50_spill]] %s3423_s11 }
   0xc   :  { %3458 = sst [smem:[#allocation51_spill]] %s3424_s12 }
   0xd   :  { %3459 = sst [smem:[#allocation52_spill]] %s3425_s13 }
   0xe   :  { %3460 = sst [smem:[#allocation53_spill]] %s3427_s15 }
   0xf   :  { %s3461_s27 = sld [smem:[#allocation40_spill]] }
  0x15   :  { %s30_s10 = sshll.u32 %s3461_s27, 4  ;;  %s31_s10 = int_to_ptr.hbm [resolvable:$true] %s30_s10 }
  0x16   :  { %33 = dma.hbm_to_smem %s31_s10, 16, %s2854_s29, [#allocation2] }
  0x17   :  { %38 = dma.hbm_to_smem %s36_s3, 16, %s2855_s0, [#allocation2] }
  0x18   :  { %2804 = dma.done.wait [#allocation2], 32 }
  0x19   :  { %2805 = vsyncadd [#allocation2], 4294967264 }
  0x1a   :  { %41 = sfence }
  0x1b   :  { %42 = vsyncpa [#allocation6], 0 }
  0x1c   :  { %43 = vsyncpa [#allocation9], 0 }
  0x1d   :  { %44 = vsyncpa [#allocation12], 0 }
  0x1e   :  { %45 = vsyncpa [#allocation15], 0 }
  0x1f   :  { %46 = vsyncpa [#allocation18], 0 }
  0x20   :  { %47 = vsyncpa [#allocation21], 0 }
  0x21   :  { %48 = vsyncpa [#allocation24], 0 }
  0x22   :  { %49 = vsyncpa [#allocation7], 0 }
  0x23   :  { %51 = vsyncpa [#allocation7 + $0x1], 0  ;;  %s3017_s8 = smov 0   ;;  %s3019_s1 = smov 0  }
  0x24   :  { %s3021_s30 = smov 0   ;;  %s3023_s10 = smov 0  }
  0x25 LB: > { %3462 = sst [smem:[#allocation35_spill]] %s2840_s8  ;;  %s3038_s4 = sadd.s32 4294967295, %s2852_s10   ;;  %s2852_s10 = sphi %s3023_s10, %s3489_s10   ;;  %s2848_s30 = sphi %s3021_s30, %s3491_s30   ;;  %s2844_s1 = sphi %s3019_s1, %s3493_s1   ;;  %s2840_s8 = sphi %s3017_s8, %s3492_s8  }
  0x26   : > { %3463 = sst [smem:[#allocation36_spill]] %s2848_s30  ;;  %s2005_s25 = sadd.s32 4294967294, %s2852_s10  }
  0x27   : > { %s3042_s9 = sadd.s32 1, %s2852_s10   ;;  %s536_s5 = sadd.s32 1, %s2848_s30 }
  0x28   : > { %3464 = sst [smem:[#allocation37_spill]] %s3042_s9  ;;  %s533_s2 = ssub.s32 %s2852_s10, %s3042_s9 }
  0x29   : > { %p546_p0 = scmp.ne.s32.totalorder %s2848_s30, %s2844_s1  ;;  %p534_p1 = scmp.eq.s32.totalorder %s533_s2, 0 }
  0x2a   : > { %p547_p2 = scmp.eq.s32.totalorder %s3038_s4, 1  ;;  %p552_p3 = scmp.ne.s32.totalorder %s2844_s1, %s2840_s8 }
  0x2b   : > { %p553_p4 = scmp.eq.s32.totalorder %s2005_s25, 1  ;;  %p2006_p7 = scmp.ge.s32.totalorder %s2852_s10, 1 }
  0x2c   : > { %s3053_s6 = scalar_select %p534_p1, %s2848_s30, %s536_s5  }
  0x2d   : > { %p3055_p5 = por %p547_p2, %p546_p0  ;;  %p3059_p6 = por %p553_p4, %p552_p3 }
  0x2e   : > { %3465 = sst [smem:[#allocation38_spill]] %s3053_s6  ;;  %p560_p8 = scmp.lt.s32.totalorder %s2852_s10, 3 }
  0x2f   : > { %s3467_s27 = scalar_select %p3059_p6, 1, 0 }
  0x30   : > { %p2234_p9 = scmp.eq.s32.totalorder %s3038_s4, 0  ;;  %p3066_p10 = pnand %p2006_p7, %p560_p8 }
  0x31   : > { %3468 = sst [smem:[#allocation39_spill]] %s3467_s27  ;;  %s2856_s0 = smov [#allocation8]  }
  0x32   : > { %s3470_s11 = sld [smem:[#allocation50_spill]]  ;;  %p2193_p11 = pneg %p3066_p10 }
  0x33   : > { %s606_s25 = sshll.u32 %s2856_s0, 4  ;;  %s3471_s13 = sld [smem:[#allocation52_spill]]  ;;  %s607_s25 = int_to_ptr.vmem [resolvable:$true] %s606_s25 }
  0x34   : > { %p3080_p12 = pnand %p2234_p9, %p2193_p11  ;;  %s3473_s15 = sld [smem:[#allocation53_spill]] }
  0x35   : > { %s2857_s9 = smov [#allocation11]   ;;  %s2858_s27 = smov [#allocation14]  }
  0x36   : > { %s632_s0 = sshll.u32 %s2857_s9, 4  ;;  %s658_s8 = sshll.u32 %s2858_s27, 4  ;;  %s633_s0 = int_to_ptr.vmem [resolvable:$true] %s632_s0  ;;  %s659_s8 = int_to_ptr.vmem [resolvable:$true] %s658_s8 }
  0x37   : > { %s2859_s7 = smov [#allocation17]   ;;  %s2860_s27 = smov [#allocation20]  }
  0x38   : > { %s604_s29 = sshll.u32 %s3470_s11, 4  ;;  %s684_s9 = sshll.u32 %s2859_s7, 4  ;;  %s605_s29 = int_to_ptr.hbm [resolvable:$true] %s604_s29  ;;  %s685_s9 = int_to_ptr.vmem [resolvable:$true] %s684_s9 }
  0x39   : > { %s630_s6 = sshll.u32 %s3471_s13, 4  ;;  %s682_s13 = sshll.u32 %s3429_s17, 4  ;;  %s631_s6 = int_to_ptr.hbm [resolvable:$true] %s630_s6  ;;  %s683_s13 = int_to_ptr.hbm [resolvable:$true] %s682_s13 }
  0x3a   : > { %s656_s11 = sshll.u32 %s3473_s15, 4  ;;  %s708_s2 = sshll.u32 %s2860_s27, 4  ;;  %s657_s11 = int_to_ptr.hbm [resolvable:$true] %s656_s11  ;;  %s709_s2 = int_to_ptr.vmem [resolvable:$true] %s708_s2 }
  0x3b   : > { %2199 = dma.hbm_to_vmem [thread:$0]  (!%p3080_p12), %s605_s29, 16, %s607_s25, [#allocation9]  }
  0x3c   : > { %2205 = dma.hbm_to_vmem [thread:$0]  (!%p3080_p12), %s631_s6, 16, %s633_s0, [#allocation12]  }
  0x3d   : > { %2211 = dma.hbm_to_vmem [thread:$0]  (!%p3080_p12), %s657_s11, 16, %s659_s8, [#allocation15]  }
  0x3e   : > { %s706_s29 = sshll.u32 %s3431_s19, 4  ;;  %s3474_s0 = sld [smem:[#allocation47_spill]]  ;;  %s707_s29 = int_to_ptr.hbm [resolvable:$true] %s706_s29 }
  0x3f   : > { %2217 = dma.hbm_to_vmem [thread:$0]  (!%p3080_p12), %s683_s13, 16, %s685_s9, [#allocation18]  }
  0x40   : > { %2223 = dma.hbm_to_vmem [thread:$0]  (!%p3080_p12), %s707_s29, 16, %s709_s2, [#allocation21]  }
  0x41   : > { %s2861_s11 = smov [#allocation5]   ;;  %s2862_s15 = smov 64  }
  0x42   : > { %s585_s8 = sshll.u32 %s2861_s11, 4  ;;  %s2863_s7 = smov 4   ;;  %s586_s8 = int_to_ptr.vmem [resolvable:$true] %s585_s8 }
  0x43   : > { %s3475_s12 = sld [smem:[#allocation51_spill]]  ;;  %s2864_s6 = smov [#allocation10]  }
  0x44   : > { %s583_s5 = sshll.u32 %s3474_s0, 4  ;;  %s617_s25 = sshll.u32 %s2864_s6, 4  ;;  %s584_s5 = int_to_ptr.hbm [resolvable:$true] %s583_s5  ;;  %s618_s25 = int_to_ptr.vmem [resolvable:$true] %s617_s25 }
  0x45   : > { %2196 = dma.hbm_to_vmem [thread:$0]  (!%p3080_p12), %s584_s5, 256, %s586_s8, [#allocation6], %s2862_s15, %s2862_s15, %s2863_s7  }
  0x46   : > { %s641_s27 = sshll.u32 %s3426_s14, 4  ;;  %s2865_s5 = smov [#allocation13]   ;;  %s642_s27 = int_to_ptr.hbm [resolvable:$true] %s641_s27 }
  0x47   : > { %s643_s2 = sshll.u32 %s2865_s5, 4  ;;  %s667_s13 = sshll.u32 %s3428_s16, 4  ;;  %s644_s2 = int_to_ptr.vmem [resolvable:$true] %s643_s2  ;;  %s668_s13 = int_to_ptr.hbm [resolvable:$true] %s667_s13 }
  0x48   : > { %2208 = dma.hbm_to_vmem [thread:$0]  (!%p3080_p12), %s642_s27, 256, %s644_s2, [#allocation12], %s2862_s15, %s2862_s15, %s2863_s7  }
  0x49   : > { %s615_s3 = sshll.u32 %s3475_s12, 4  ;;  %s694_s29 = sshll.u32 %s3430_s18, 4  ;;  %s616_s3 = int_to_ptr.hbm [resolvable:$true] %s615_s3  ;;  %s695_s29 = int_to_ptr.hbm [resolvable:$true] %s694_s29 }
  0x4a   : > { %2202 = dma.hbm_to_vmem [thread:$0]  (!%p3080_p12), %s616_s3, 256, %s618_s25, [#allocation9], %s2862_s15, %s2862_s15, %s2863_s7  }
  0x4b   : > { %s2866_s3 = smov [#allocation16]   ;;  %s2867_s0 = smov [#allocation19]  }
  0x4c   : > { %s669_s25 = sshll.u32 %s2866_s3, 4  ;;  %s696_s5 = sshll.u32 %s2867_s0, 4  ;;  %s670_s25 = int_to_ptr.vmem [resolvable:$true] %s669_s25  ;;  %s697_s5 = int_to_ptr.vmem [resolvable:$true] %s696_s5 }
  0x4d   : > { %2214 = dma.hbm_to_vmem [thread:$0]  (!%p3080_p12), %s668_s13, 256, %s670_s25, [#allocation15], %s2862_s15, %s2862_s15, %s2863_s7  }
  0x4e   : > { %s717_s27 = sshll.u32 %s3432_s20, 4  ;;  %s732_s6 = sshll.u32 %s3433_s21, 4  ;;  %s718_s27 = int_to_ptr.hbm [resolvable:$true] %s717_s27  ;;  %s733_s6 = int_to_ptr.hbm [resolvable:$true] %s732_s6 }
  0x4f   : > { %2220 = dma.hbm_to_vmem [thread:$0]  (!%p3080_p12), %s695_s29, 16, %s697_s5, [#allocation18]  }
  0x50   : > { %s2868_s3 = smov [#allocation22]   ;;  %s2869_s13 = smov [#allocation23]  }
  0x51   : > { %s719_s12 = sshll.u32 %s2868_s3, 4  ;;  %s734_s25 = sshll.u32 %s2869_s13, 4  ;;  %s720_s12 = int_to_ptr.vmem [resolvable:$true] %s719_s12  ;;  %s735_s25 = int_to_ptr.vmem [resolvable:$true] %s734_s25 }
  0x52   : > { %2226 = dma.hbm_to_vmem [thread:$0]  (!%p3080_p12), %s718_s27, 256, %s720_s12, [#allocation21], %s2862_s15, %s2862_s15, %s2863_s7  }
  0x53   : > { %2229 = dma.hbm_to_vmem [thread:$0]  (!%p3080_p12), %s733_s6, 16, %s735_s25, [#allocation24]  }
  0x54   : > { %767 = sbr.rel (%p3066_p10) target bundleno = 2939 (0xb7b), region = 108 }
  0x59   : > { %2807 = dma.done.wait (%p2234_p9), [#allocation6], 256  }
  0x5a   : > { %2809 = vsyncadd (%p2234_p9), [#allocation6], 4294967040 }
  0x5b   : > { %2811 = dma.done.wait (%p2234_p9), [#allocation9], 272  }
  0x5c   : > { %2813 = vsyncadd (%p2234_p9), [#allocation9], 4294967024 }
  0x5d   : > { %2815 = dma.done.wait (%p2234_p9), [#allocation12], 272  }
  0x5e   : > { %2817 = vsyncadd (%p2234_p9), [#allocation12], 4294967024 }
  0x5f   : > { %2819 = dma.done.wait (%p2234_p9), [#allocation15], 272  }
  0x60   : > { %2821 = vsyncadd (%p2234_p9), [#allocation15], 4294967024 }
  0x61   : > { %2823 = dma.done.wait (%p2234_p9), [#allocation18], 32  }
  0x62   : > { %2825 = vsyncadd (%p2234_p9), [#allocation18], 4294967264 }
  0x63   : > { %2827 = dma.done.wait (%p2234_p9), [#allocation21], 272  }
  0x64   : > { %2829 = vsyncadd (%p2234_p9), [#allocation21], 4294967024 }
  0x65   : > { %2831 = dma.done.wait (%p2234_p9), [#allocation24], 16  }
  0x66   : > { %2833 = vsyncadd (%p2234_p9), [#allocation24], 4294967280  ;;  %p888_p13 = scmp.lt.s32.totalorder %s3038_s4, 1  ;;  %s3476_s7 = sld [smem:[#allocation41_spill]]  ;;  %vm913_vm0 = vcmask 261120   ;;  %v2870_v4 = vmov 32.0   ;;  %v899_v57 = vlaneseq }
  0x67   : > { %2336 = vrcp.f32 %v2870_v4  ;;  %s3477_s11 = sld [smem:[#allocation45_spill]]  ;;  %s2872_s0 = smov 104   ;;  %vm1001_vm5 = vcmask 64512   ;;  %v2878_v61 = vmov -1e+09   ;;  %vm1038_vm9 = vcmask 1043456  }
  0x68   : > { %s3185_s12 = scalar_select %p888_p13, %s3038_s4, 1  ;;  %v900_v58 = vshrl.u32 %v899_v57, 7  ;;  %v3243_v59 = vand.u32 127, %v899_v57  ;;  %vm1239_vm10 = vcmask 130048   ;;  %vm1241_vm11 = vcmask 195584  }
  0x69   : > { %s3478_s6 = sld [smem:[#allocation43_spill]]  ;;  %s2873_s5 = smov 120  }
  0x6a   : > { %s2034_s30 = sshll.u32 %s3185_s12, 3  ;;  %s3479_s25 = sld [smem:[#allocation44_spill]]  ;;  %vm903_vm6 = vcmp.le.s32.totalorder %v3243_v59, %v900_v58 }
  0x6b   : > { %s2874_s8 = smov 88   ;;  %s2875_s27 = smov 72  }
  0x6c   : > { %s891_s29 = scalar_lea.vmem %s3476_s7, %s2034_s30  ;;  %s3480_s7 = sld [smem:[#allocation46_spill]] }
  0x6d   : > { %v3193_v0 = vld [vmem:[%s891_s29] sm:$0xff]  ;;  %v2337_v5 = vpop.eup %2336  ;;  %v2128_v10 = vld [vmem:[%s3477_s11 + $0x8] sm:$0xff]  ;;  %s2871_s29 = smov 96   ;;  %s2876_s2 = smov 80  }
  0x6e   : > { %v914_v1 = vsel %vm913_vm0, %v3193_v0, 0.0  ;;  %v925_v2 = vmul.f32 %v3193_v0, %v3193_v0  ;;  %v918_v6 = vmul.f32 32.0, %v2337_v5  ;;  %vm922_vm1 = vweird.f32 %v2337_v5  ;;  %986 = vmatpush.bf16.msra.mxu0 %v2128_v10  ;;  %v2127_v12 = vld [vmem:[%s3477_s11] sm:$0xff]  ;;  %s2877_s9 = smov 112   ;;  %s2879_s3 = smov 64  }
  0x6f   : > { %915 = vadd.xlane.f32.xlu0 %v914_v1  ;;  %v2323_v25 = vld [vmem:[%s3478_s6] ss:$0 sm:$0xff]  ;;  %s897_s6 = sld [smem:[#allocation3 + %s3038_s4]]  ;;  %s2880_s13 = smov 56  }
  0x70   : > { %v926_v3 = vsel %vm913_vm0, %v925_v2, 0.0  ;;  %v919_v7 = vsub.f32 1.0, %v918_v6  ;;  %v2324_v29 = vld [vmem:[%s3479_s25] ss:$0 sm:$0xff]  ;;  %s2881_s25 = smov 40   ;;  %s2882_s28 = smov 48  }
  0x71   : > { %s3446_s15 = smov 8  }
  0x72   : > { %v920_v8 = vmul.f32 %v2337_v5, %v919_v7  ;;  %987 = vmatpush.bf16.msra.mxu0 %v2127_v12  ;;  %v2325_v35 = vld [vmem:[%s3480_s7] ss:$0 sm:$0xff]  ;;  %s3444_s7 = smov 24  }
  0x74   : > { %v921_v9 = vadd.f32 %v2337_v5, %v920_v8 }
  0x75   : > { %v904_v60 = vstv %s897_s6  ;;  %s3445_s6 = smov 16  }
  0x76   : > { %v3206_v13 = vsel %vm922_vm1, %v2337_v5, %v921_v9  ;;  %vm905_vm7 = vcmp.lt.s32.totalorder %v3243_v59, %v904_v60 }
  0x77   : > { %927 = vadd.xlane.f32.xlu0 %v926_v3  ;;  %vm906_vm8 = vmand %vm903_vm6, %vm905_vm7 }
  0x78   : > { %v907_v62 = vsel %vm906_vm8, 0.0, %v2878_v61 }
  0xe2   : > { %v916_v11 = vpop.xlane.xlu0 %915 }
  0xe3   : > { %v924_v14 = vmul.f32 %v3206_v13, %v916_v11 }
  0xe5   : > { %v930_v16 = vmul.f32 %v924_v14, %v924_v14 }
  0xea   : > { %v928_v15 = vpop.xlane.xlu0 %927 }
  0xeb   : > { %v929_v17 = vmul.f32 %v928_v15, %v3206_v13 }
  0xed   : > { %v931_v18 = vsub.f32 %v929_v17, %v930_v16 }
  0xef   : > { %v932_v19 = vadd.f32 1e-05, %v931_v18 }
  0xf1   : > { %2338 = vrsqrt.f32 %v932_v19  ;;  %vm939_vm3 = vweird.f32 %v932_v19 }
  0xf7   : > { %v2339_v20 = vpop.eup %2338 }
  0xf8   : > { %v934_v21 = vmul.f32 %v2339_v20, %v932_v19  ;;  %vm940_vm2 = vweird.f32 %v2339_v20 }
  0xf9   : > { %vm941_vm4 = vmor %vm939_vm3, %vm940_vm2 }
  0xfa   : > { %v935_v22 = vmul.f32 %v2339_v20, %v934_v21 }
  0xfc   : > { %v936_v23 = vmul.f32 0.5, %v935_v22 }
  0xfe   : > { %v937_v24 = vsub.f32 1.5, %v936_v23 }
 0x100   : > { %v938_v26 = vmul.f32 %v2339_v20, %v937_v24 }
 0x102   : > { %v942_v27 = vsel %vm941_vm4, %v2339_v20, %v938_v26  ;;  %vm1782_vm4 = vcmask 523264  }
 0x103   : > { %v947_v28 = vmul.f32 %v2323_v25, %v942_v27 }
 0x105   : > { %v950_v30 = vmul.f32 %v947_v28, %v924_v14  ;;  %v948_v31 = vmul.f32 %v947_v28, %v3193_v0 }
 0x107   : > { %v954_v32 = vsub.f32 %v2324_v29, %v950_v30 }
 0x109   : > { %v955_v33 = vadd.f32 %v954_v32, %v948_v31 }
 0x10b   : > { %v956_v34 = vpack.c.bf16 %v955_v33, %v955_v33 }
 0x10d   : > { %2044 = vmatmul.msk.bf16.vlgmr.msra.gmra.mxu0 %vm913_vm0, %v956_v34 }
 0x18a   : > { %v989_v36 = vpop.f32.mrf.mxu0 }
 0x18b   : > { %v990_v37 = vadd.f32 %v2325_v35, %v989_v36 }
 0x18d   : > { %v993_v38 = vmul.f32 0.35355338, %v990_v37  ;;  %v995_v39 = vpack.c.bf16 %v990_v37, %v990_v37 }
 0x18f   : > { %v994_v40 = vpack.c.bf16 %v993_v38, %v993_v38  ;;  %v997_v41 = vunpack.c.l.b16 %v995_v39 }
 0x191   : > { %v3221_v42 = vpack.c.b16 %v997_v41, %v997_v41  ;;  %v1056_v43 = vunpack.c.l.b16 %v994_v40 }
 0x192   : > { %v991_v44 = vpop.f32.mrf.mxu0 }
 0x193   : > { %999 = vrot.lane.b32.xlu1 %v3221_v42, %s2871_s29  ;;  %v1057_v45 = vpack.c.b16 %v1056_v43, %v1056_v43 }
 0x195   : > { %1170 = vrot.lane.b32.xlu0 %v1057_v45, %s2872_s0  ;;  %1058 = vrot.lane.b32.xlu2 %v1057_v45, %s2873_s5 }
 0x19b   : > { %1060 = vrot.lane.b32.xlu1 %v3221_v42, %s2874_s8 }
 0x19d   : > { %1172 = vrot.lane.b32.xlu2 %v3221_v42, %s2875_s27 }
 0x1a3   : > { %1116 = vrot.lane.b32.xlu1 %v3221_v42, %s2876_s2 }
 0x1a5   : > { %1114 = vrot.lane.b32.xlu2 %v1057_v45, %s2877_s9 }
 0x1ef   : > { %v1059_v46 = vpop.permute.xlu2 %1058 }
 0x1f7   : > { %v1173_v49 = vpop.permute.xlu2 %1172 }
 0x1f8   : > { %v1178_v52 = vsel %vm1001_vm5, %v1173_v49, 0 }
 0x1ff   : > { %v1115_v55 = vpop.permute.xlu2 %1114 }
 0x205   : > { %v1000_v47 = vpop.permute.xlu1 %999 }
 0x206   : > { %v1006_v48 = vsel %vm1001_vm5, %v1000_v47, 0 }
 0x207   : > { %1015 = vmatpush.bf16.xpose.msra.mxu1 %v1006_v48  ;;  %v1171_v56 = vpop.permute.xlu0 %1170 }
 0x20d   : > { %v1061_v50 = vpop.permute.xlu1 %1060 }
 0x20e   : > { %2045 = vmatmul.msk.bf16.vlgmr.msra.gmra.mxu1 %vm1001_vm5, %v994_v40  ;;  %v1066_v51 = vsel %vm1001_vm5, %v1061_v50, 0 }
 0x20f   : > { %1075 = vmatpush.bf16.xpose.msra.mxu3 %v1066_v51 }
 0x215   : > { %v1117_v53 = vpop.permute.xlu1 %1116 }
 0x216   : > { %2047 = vmatmul.msk.bf16.vlgmr.msra.gmra.mxu3 %vm1001_vm5, %v1059_v46  ;;  %v1122_v54 = vsel %vm1001_vm5, %v1117_v53, 0 }
 0x217   : > { %1187 = vmatpush.bf16.xpose.msrb.mxu3 %v1178_v52  ;;  %1131 = vmatpush.bf16.xpose.msrb.mxu0 %v1122_v54 }
 0x21e   : > { %2049 = vmatmul.msk.bf16.vlgmr.msrb.gmra.mxu0 %vm1001_vm5, %v1115_v55 }
 0x226   : > { %2051 = vmatmul.msk.bf16.vlgmr.msrb.gmra.mxu3 %vm1001_vm5, %v1171_v56 }
 0x28b   : > { %v1017_v63 = vpop.f32.mrf.mxu1 }
 0x28c   : > { %v1018_v1 = vadd.f32 %v1017_v63, %v907_v62 }
 0x28e   : > { %v1021_v2 = vsel %vm1001_vm5, %v1018_v1, -inf }
 0x28f   : > { %1022 = vmax.xlane.f32.xlu1 %v1021_v2 }
 0x293   : > { %v1019_v3 = vpop.f32.mrf.mxu1 }
 0x299   : > { %v1077_v4 = vpop.f32.mrf.mxu3 }
 0x29a   : > { %v1078_v5 = vadd.f32 %v1077_v4, %v907_v62 }
 0x29b   : > { %v1133_v6 = vpop.f32.mrf.mxu0 }
 0x29c   : > { %v1081_v7 = vsel %vm1001_vm5, %v1078_v5, -inf  ;;  %v1134_v8 = vadd.f32 %v1133_v6, %v907_v62 }
 0x29d   : > { %1082 = vmax.xlane.f32.xlu2 %v1081_v7 }
 0x29e   : > { %v1137_v11 = vsel %vm1001_vm5, %v1134_v8, -inf }
 0x2a1   : > { %v1079_v9 = vpop.f32.mrf.mxu3 }
 0x2a2   : > { %v2129_v9 = vld [vmem:[#allocation5] sm:$0xff] }
 0x2a3   : > { %v1135_v10 = vpop.f32.mrf.mxu0 }
 0x2a5   : > { %1138 = vmax.xlane.f32.xlu2 %v1137_v11 }
 0x2a9   : > { %v1189_v12 = vpop.f32.mrf.mxu3 }
 0x2aa   : > { %v1190_v14 = vadd.f32 %v1189_v12, %v907_v62 }
 0x2ac   : > { %v1193_v15 = vsel %vm1001_vm5, %v1190_v14, -inf }
 0x2ad   : > { %1194 = vmax.xlane.f32.xlu0 %v1193_v15 }
 0x2b1   : > { %v1191_v16 = vpop.f32.mrf.mxu3 }
 0x2bd   : > { %1033 = vrot.lane.b32.xlu2 %v3221_v42, %s2879_s3 }
 0x2c1   : > { %1093 = vrot.lane.b32.xlu0 %v3221_v42, %s2880_s13 }
 0x2c5   : > { %1205 = vrot.lane.b32.xlu2 %v3221_v42, %s2881_s25  ;;  %s3481_s25 = sld [smem:[#allocation42_spill]] }
 0x2c9   : > { %1149 = vrot.lane.b32.xlu0 %v3221_v42, %s2882_s28 }
 0x2cb   : > { %s895_s28 = scalar_lea.vmem %s3481_s25, %s2034_s30  ;;  %s2124_s30 = sshll.u32 %s3038_s4, 3 }
 0x2cc   : > { %s2780_s25 = scalar_lea.hbm %s3436_s24, 16 }
 0x302   : > { %v1023_v17 = vpop.xlane.xlu1 %1022 }
 0x303   : > { %v1024_v18 = vsub.f32 %v1018_v1, %v1023_v17 }
 0x305   : > { %v1025_v19 = vmul.f32 1.442695, %v1024_v18  ;;  %v2134_v18 = vld [vmem:[#allocation13 + $0x8] sm:$0xff] }
 0x306   : > { %1383 = vmatpush.bf16.msra.mxu3 %v2134_v18 }
 0x307   : > { %2340 = vpow2.f32 %v1025_v19  ;;  %v912_v19 = vld [vmem:[%s895_s28] sm:$0xff]  ;;  %s885_s28 = sand.u32 1, %s2844_s1  }
 0x308   : > { %s2033_s12 = sshll.u32 %s885_s28, 3 }
 0x30d   : > { %v2341_v20 = vpop.eup %2340 }
 0x30e   : > { %v1027_v21 = vsel %vm1001_vm5, %v2341_v20, 0.0 }
 0x30f   : > { %1028 = vadd.xlane.f32.xlu1 %v1027_v21  ;;  %v1353_v21 = vpack.c.bf16 %v912_v19, %v912_v19 }
 0x310   : > { %v1083_v22 = vpop.xlane.xlu2 %1082 }
 0x311   : > { %v1084_v23 = vsub.f32 %v1078_v5, %v1083_v22 }
 0x313   : > { %v1085_v24 = vmul.f32 1.442695, %v1084_v23 }
 0x315   : > { %2342 = vpow2.f32 %v1085_v24 }
 0x318   : > { %v1139_v25 = vpop.xlane.xlu2 %1138 }
 0x319   : > { %v1140_v32 = vsub.f32 %v1134_v8, %v1139_v25  ;;  %v2130_v8 = vld [vmem:[#allocation5 + $0x8] sm:$0xff] }
 0x31a   : > { %1273 = vmatpush.bf16.msra.mxu0 %v2130_v8 }
 0x31b   : > { %v2343_v26 = vpop.eup %2342  ;;  %v1141_v34 = vmul.f32 1.442695, %v1140_v32 }
 0x31c   : > { %v1087_v27 = vsel %vm1001_vm5, %v2343_v26, 0.0 }
 0x31d   : > { %1088 = vadd.xlane.f32.xlu1 %v1087_v27 }
 0x31e   : > { %1274 = vmatpush.bf16.msra.mxu0 %v2129_v9 }
 0x320   : > { %v1195_v28 = vpop.xlane.xlu0 %1194  ;;  %v1034_v29 = vpop.permute.xlu2 %1033 }
 0x321   : > { %v1196_v30 = vsub.f32 %v1190_v14, %v1195_v28  ;;  %v1040_v31 = vsel %vm1038_vm9, %v1034_v29, 0 }
 0x322   : > { %1049 = vmatpush.bf16.msra.mxu2 %v1040_v31  ;;  %v2131_v31 = vld [vmem:[#allocation10] sm:$0xff] }
 0x323   : > { %v1197_v33 = vmul.f32 1.442695, %v1196_v30  ;;  %v2132_v30 = vld [vmem:[#allocation10 + $0x8] sm:$0xff] }
 0x325   : > { %2344 = vpow2.f32 %v1197_v33 }
 0x326   : > { %2346 = vpow2.f32 %v1141_v34 }
 0x328   : > { %v1206_v46 = vpop.permute.xlu2 %1205 }
 0x329   : > { %v1211_v48 = vsel %vm1038_vm9, %v1206_v46, 0 }
 0x32b   : > { %v2345_v35 = vpop.eup %2344 }
 0x32c   : > { %v1199_v36 = vsel %vm1001_vm5, %v2345_v35, 0.0  ;;  %v2347_v37 = vpop.eup %2346 }
 0x32d   : > { %1200 = vadd.xlane.f32.xlu1 %v1199_v36  ;;  %v1143_v40 = vsel %vm1001_vm5, %v2347_v37, 0.0 }
 0x333   : > { %v1094_v38 = vpop.permute.xlu0 %1093 }
 0x334   : > { %v1099_v39 = vsel %vm1038_vm9, %v1094_v38, 0 }
 0x335   : > { %1108 = vmatpush.bf16.msrb.mxu2 %v1099_v39  ;;  %1144 = vadd.xlane.f32.xlu1 %v1143_v40 }
 0x33b   : > { %v1150_v41 = vpop.permute.xlu0 %1149 }
 0x33c   : > { %v1155_v42 = vsel %vm1038_vm9, %v1150_v41, 0 }
 0x33d   : > { %1164 = vmatpush.bf16.msrb.mxu1 %v1155_v42 }
 0x341   : > { %1346 = vmatpush.bf16.msra.mxu1 %v2132_v30 }
 0x345   : > { %1347 = vmatpush.bf16.msra.mxu1 %v2131_v31 }
 0x382   : > { %v1029_v43 = vpop.xlane.xlu1 %1028 }
 0x383   : > { %2348 = vrcp.f32 %v1029_v43 }
 0x389   : > { %v2349_v44 = vpop.eup %2348 }
 0x38a   : > { %v1031_v45 = vmul.f32 %v2349_v44, %v2341_v20  ;;  %v2133_v20 = vld [vmem:[#allocation13] sm:$0xff] }
 0x38b   : > { %1384 = vmatpush.bf16.msra.mxu3 %v2133_v20 }
 0x38c   : > { %v1032_v47 = vpack.c.bf16 %v1031_v45, %v1031_v45 }
 0x38e   : > { %2046 = vmatmul.msk.bf16.vlgmr.msra.gmra.mxu2 %vm1001_vm5, %v1032_v47  ;;  %2079 = vmatmul.msk.bf16.vlgmr.msra.gmra.mxu3 %vm913_vm0, %v1353_v21 }
 0x38f   : > { %1220 = vmatpush.bf16.msra.mxu2 %v1211_v48 }
 0x390   : > { %v1089_v49 = vpop.xlane.xlu1 %1088 }
 0x391   : > { %2350 = vrcp.f32 %v1089_v49 }
 0x397   : > { %v2351_v50 = vpop.eup %2350 }
 0x398   : > { %v1091_v51 = vmul.f32 %v2351_v50, %v2343_v26 }
 0x39a   : > { %v1092_v52 = vpack.c.bf16 %v1091_v51, %v1091_v51 }
 0x39e   : > { %2048 = vmatmul.msk.bf16.vlgmr.msrb.gmra.mxu2 %vm1001_vm5, %v1092_v52 }
 0x3a0   : > { %v1201_v53 = vpop.xlane.xlu1 %1200 }
 0x3a1   : > { %2352 = vrcp.f32 %v1201_v53 }
 0x3a7   : > { %v2353_v54 = vpop.eup %2352 }
 0x3a8   : > { %v1203_v55 = vmul.f32 %v2353_v54, %v2345_v35  ;;  %v1145_v56 = vpop.xlane.xlu1 %1144 }
 0x3a9   : > { %2354 = vrcp.f32 %v1145_v56 }
 0x3aa   : > { %v1204_v57 = vpack.c.bf16 %v1203_v55, %v1203_v55  ;;  %v2328_v55 = vld [vmem:[#allocation8] ss:$0 sm:$0xff] }
 0x3ae   : > { %2052 = vmatmul.msk.bf16.vlgmr.msra.gmra.mxu2 %vm1001_vm5, %v1204_v57 }
 0x3af   : > { %v2355_v58 = vpop.eup %2354 }
 0x3b0   : > { %v1147_v60 = vmul.f32 %v2355_v58, %v2347_v37  ;;  %v2329_v37 = vld [vmem:[#allocation14] ss:$0 sm:$0xff] }
 0x3b2   : > { %v1148_v62 = vpack.c.bf16 %v1147_v60, %v1147_v60 }
 0x3b4   : > { %2050 = vmatmul.msk.bf16.vlgmr.msrb.gmra.mxu1 %vm1001_vm5, %v1148_v62 }
 0x411   : > { %v1051_v63 = vpop.f32.mrf.mxu2  ;;  %v1386_v38 = vpop.f32.mrf.mxu3 }
 0x412   : > { %v1387_v40 = vadd.f32 %v2329_v37, %v1386_v38 }
 0x414   : > { %v1392_v41 = vpack.c.bf16 %v1387_v40, %v1387_v40 }
 0x416   : > { %v1397_v42 = vsel %vm1001_vm5, %v1392_v41, 0  ;;  %v1425_v43 = vunpack.c.l.b16 %v1392_v41 }
 0x417   : > { %1406 = vmatpush.bf16.xpose.msrb.mxu2 %v1397_v42 }
 0x418   : > { %v3295_v44 = vpack.c.b16 %v1425_v43, %v1425_v43 }
 0x419   : > { %v1053_v1 = vpop.f32.mrf.mxu2  ;;  %v1388_v45 = vpop.f32.mrf.mxu3 }
 0x421   : > { %v1110_v2 = vpop.f32.mrf.mxu2 }
 0x422   : > { %1227 = vrot.lane.b32.xlu1 %v1110_v2, %s3446_s15  ;;  %s3482_s15 = sld [smem:[#allocation48_spill]]  ;;  %v2330_v2 = vld [vmem:[#allocation11] ss:$0 sm:$0xff] }
 0x428   : > { %v2326_v22 = vld [vmem:[%s3482_s15] ss:$0 sm:$0xff]  ;;  %s3483_s15 = sld [smem:[#allocation49_spill]] }
 0x429   : > { %v1112_v3 = vpop.f32.mrf.mxu2 }
 0x42a   : > { %1453 = vrot.lane.b32.xlu1 %v3295_v44, %s2873_s5 }
 0x42e   : > { %v2327_v51 = vld [vmem:[%s3483_s15] ss:$0 sm:$0xff] }
 0x431   : > { %v1166_v4 = vpop.f32.mrf.mxu1  ;;  %v1222_v5 = vpop.f32.mrf.mxu2 }
 0x432   : > { %1235 = vrot.lane.b32.xlu0 %v1222_v5, %s3444_s7  ;;  %1231 = vrot.lane.b32.xlu2 %v1166_v4, %s3445_s6  ;;  %s898_s7 = sld [smem:[#allocation4 + %s3038_s4]]  ;;  %s1802_s4 = scalar_lea.sflag [#allocation7], %s885_s28 }
 0x433   : > { %1509 = vrot.lane.b32.xlu1 %v3295_v44, %s2877_s9 }
 0x439   : > { %v1168_v6 = vpop.f32.mrf.mxu1  ;;  %v1224_v7 = vpop.f32.mrf.mxu2 }
 0x48c   : > { %v1232_v12 = vpop.permute.xlu2 %1231 }
 0x494   : > { %v1228_v10 = vpop.permute.xlu1 %1227 }
 0x495   : > { %v1238_v11 = vsel %vm1001_vm5, %v1051_v63, %v1228_v10 }
 0x496   : > { %v1240_v15 = vsel %vm1239_vm10, %v1238_v11, %v1232_v12 }
 0x49c   : > { %v1454_v63 = vpop.permute.xlu1 %1453 }
 0x49d   : > { %v1459_v1 = vsel %vm1001_vm5, %v1454_v63, 0 }
 0x49e   : > { %1468 = vmatpush.bf16.xpose.msrb.mxu1 %v1459_v1 }
 0x4a4   : > { %v1236_v14 = vpop.permute.xlu0 %1235 }
 0x4a5   : > { %v1242_v16 = vsel %vm1241_vm11, %v1240_v15, %v1236_v14  ;;  %v1510_v6 = vpop.permute.xlu1 %1509  ;;  %v908_v15 = vstv %s898_s7 }
 0x4a6   : > { %v1243_v17 = vpack.c.bf16 %v1242_v16, %v1242_v16  ;;  %v1515_v7 = vsel %vm1001_vm5, %v1510_v6, 0  ;;  %vm909_vm15 = vcmp.lt.s32.totalorder %v3243_v59, %v908_v15 }
 0x4a7   : > { %1524 = vmatpush.bf16.xpose.msra.mxu2 %v1515_v7  ;;  %v910_v18 = vsel %vm909_vm15, 0.0, %v2878_v61 }
 0x4a8   : > { %2061 = vmatmul.msk.bf16.vlgmr.msra.gmra.mxu0 %vm913_vm0, %v1243_v17 }
 0x525   : > { %v1276_v23 = vpop.f32.mrf.mxu0 }
 0x526   : > { %v1277_v24 = vadd.f32 %v2326_v22, %v1276_v23 }
 0x528   : > { %v3285_v25 = vadd.f32 %v1277_v24, %v3193_v0 }
 0x52a   : > { %v1281_v26 = vsel %vm913_vm0, %v3285_v25, 0.0  ;;  %v1285_v27 = vmul.f32 %v3285_v25, %v3285_v25 }
 0x52b   : > { %1282 = vadd.xlane.f32.xlu2 %v1281_v26 }
 0x52c   : > { %v1286_v28 = vsel %vm913_vm0, %v1285_v27, 0.0 }
 0x52d   : > { %v1278_v29 = vpop.f32.mrf.mxu0  ;;  %1287 = vadd.xlane.f32.xlu0 %v1286_v28 }
 0x59e   : > { %v1283_v32 = vpop.xlane.xlu2 %1282 }
 0x59f   : > { %v1284_v33 = vmul.f32 %v1283_v32, %v3206_v13 }
 0x5a0   : > { %v1288_v34 = vpop.xlane.xlu0 %1287 }
 0x5a1   : > { %v1290_v0 = vmul.f32 %v1284_v33, %v1284_v33  ;;  %v1289_v35 = vmul.f32 %v1288_v34, %v3206_v13 }
 0x5a3   : > { %v1291_v36 = vsub.f32 %v1289_v35, %v1290_v0 }
 0x5a5   : > { %v1292_v39 = vadd.f32 1e-05, %v1291_v36 }
 0x5a7   : > { %2356 = vrsqrt.f32 %v1292_v39  ;;  %vm1299_vm13 = vweird.f32 %v1292_v39 }
 0x5ad   : > { %v2357_v46 = vpop.eup %2356 }
 0x5ae   : > { %v1294_v47 = vmul.f32 %v2357_v46, %v1292_v39  ;;  %vm1300_vm12 = vweird.f32 %v2357_v46 }
 0x5af   : > { %vm1301_vm14 = vmor %vm1299_vm13, %vm1300_vm12 }
 0x5b0   : > { %v1295_v48 = vmul.f32 %v2357_v46, %v1294_v47 }
 0x5b2   : > { %v1296_v49 = vmul.f32 0.5, %v1295_v48 }
 0x5b4   : > { %v1297_v50 = vsub.f32 1.5, %v1296_v49 }
 0x5b6   : > { %v1298_v52 = vmul.f32 %v2357_v46, %v1297_v50 }
 0x5b8   : > { %v1302_v53 = vsel %vm1301_vm14, %v2357_v46, %v1298_v52 }
 0x5b9   : > { %v1307_v54 = vmul.f32 %v2327_v51, %v1302_v53 }
 0x5bb   : > { %v1310_v56 = vmul.f32 %v1307_v54, %v1284_v33  ;;  %v1308_v57 = vmul.f32 %v1307_v54, %v3285_v25 }
 0x5bd   : > { %v1314_v58 = vsub.f32 %v2328_v55, %v1310_v56 }
 0x5bf   : > { %v1315_v60 = vadd.f32 %v1314_v58, %v1308_v57 }
 0x5c1   : > { %v1316_v62 = vpack.c.bf16 %v1315_v60, %v1315_v60 }
 0x5c3   : > { %2070 = vmatmul.msk.bf16.vlgmr.msra.gmra.mxu1 %vm913_vm0, %v1316_v62 }
 0x640   : > { %v1349_v3 = vpop.f32.mrf.mxu1 }
 0x641   : > { %v1350_v4 = vadd.f32 %v2330_v2, %v1349_v3 }
 0x643   : > { %v1390_v5 = vmul.f32 0.35355338, %v1350_v4 }
 0x645   : > { %v1391_v8 = vpack.c.bf16 %v1390_v5, %v1390_v5 }
 0x647   : > { %v1449_v9 = vunpack.c.l.b16 %v1391_v8  ;;  %2080 = vmatmul.msk.bf16.vlgmr.msrb.gmra.mxu2 %vm1001_vm5, %v1391_v8 }
 0x648   : > { %v1351_v10 = vpop.f32.mrf.mxu1 }
 0x649   : > { %v1450_v11 = vpack.c.b16 %v1449_v9, %v1449_v9 }
 0x64b   : > { %1507 = vrot.lane.b32.xlu2 %v1450_v11, %s2877_s9  ;;  %1451 = vrot.lane.b32.xlu1 %v1450_v11, %s2873_s5  ;;  %s3486_s5 = smov 24  }
 0x653   : > { %1565 = vrot.lane.b32.xlu1 %v3295_v44, %s2872_s0 }
 0x65b   : > { %1563 = vrot.lane.b32.xlu1 %v1450_v11, %s2872_s0  ;;  %s3485_s0 = smov 16  }
 0x6a5   : > { %v1508_v12 = vpop.permute.xlu2 %1507 }
 0x6a6   : > { %2084 = vmatmul.msk.bf16.vlgmr.msra.gmra.mxu2 %vm1001_vm5, %v1508_v12 }
 0x6bd   : > { %v1452_v14 = vpop.permute.xlu1 %1451 }
 0x6be   : > { %2082 = vmatmul.msk.bf16.vlgmr.msrb.gmra.mxu1 %vm1001_vm5, %v1452_v14 }
 0x6c5   : > { %v1566_v16 = vpop.permute.xlu1 %1565 }
 0x6c6   : > { %v1571_v17 = vsel %vm1001_vm5, %v1566_v16, 0 }
 0x6c7   : > { %1580 = vmatpush.bf16.xpose.msra.mxu1 %v1571_v17 }
 0x6ca   : > { %v1408_v19 = vpop.f32.mrf.mxu2 }
 0x6cb   : > { %v1409_v20 = vadd.f32 %v1408_v19, %v910_v18 }
 0x6cd   : > { %v1564_v21 = vpop.permute.xlu1 %1563  ;;  %v1412_v22 = vsel %vm1001_vm5, %v1409_v20, -inf }
 0x6ce   : > { %1413 = vmax.xlane.f32.xlu1 %v1412_v22  ;;  %2086 = vmatmul.msk.bf16.vlgmr.msra.gmra.mxu1 %vm1001_vm5, %v1564_v21 }
 0x6d2   : > { %v1410_v23 = vpop.f32.mrf.mxu2 }
 0x6e7   : > { %1427 = vrot.lane.b32.xlu1 %v3295_v44, %s2871_s29  ;;  %s3484_s29 = smov 8  }
 0x6ef   : > { %1542 = vrot.lane.b32.xlu1 %v3295_v44, %s2876_s2 }
 0x729   : > { %v1526_v59 = vpop.f32.mrf.mxu2 }
 0x72a   : > { %v1527_v29 = vadd.f32 %v1526_v59, %v910_v18 }
 0x72c   : > { %v1530_v33 = vsel %vm1001_vm5, %v1527_v29, -inf }
 0x731   : > { %v1528_v24 = vpop.f32.mrf.mxu2 }
 0x73b   : > { %v1470_v26 = vpop.f32.mrf.mxu1 }
 0x73c   : > { %v1471_v27 = vadd.f32 %v1470_v26, %v910_v18  ;;  %v2136_v26 = vld [vmem:[#allocation16 + $0x8] sm:$0xff] }
 0x73d   : > { %1664 = vmatpush.bf16.msrb.mxu2 %v2136_v26 }
 0x73e   : > { %v1474_v61 = vsel %vm1001_vm5, %v1471_v27, -inf }
 0x73f   : > { %1475 = vmax.xlane.f32.xlu0 %v1474_v61 }
 0x741   : > { %v1414_v28 = vpop.xlane.xlu1 %1413 }
 0x742   : > { %v1415_v30 = vsub.f32 %v1409_v20, %v1414_v28 }
 0x743   : > { %v1472_v31 = vpop.f32.mrf.mxu1 }
 0x744   : > { %v1416_v32 = vmul.f32 1.442695, %v1415_v30 }
 0x746   : > { %2358 = vpow2.f32 %v1416_v32 }
 0x747   : > { %1531 = vmax.xlane.f32.xlu0 %v1530_v33 }
 0x74b   : > { %v1582_v34 = vpop.f32.mrf.mxu1 }
 0x74c   : > { %v2359_v0 = vpop.eup %2358  ;;  %v1583_v36 = vadd.f32 %v1582_v34, %v910_v18  ;;  %v2331_v34 = vld [vmem:[#allocation17] ss:$0 sm:$0xff] }
 0x74d   : > { %v1418_v35 = vsel %vm1001_vm5, %v2359_v0, 0.0 }
 0x74e   : > { %v1586_v38 = vsel %vm1001_vm5, %v1583_v36, -inf }
 0x74f   : > { %1419 = vadd.xlane.f32.xlu0 %v1418_v35 }
 0x753   : > { %v1584_v37 = vpop.f32.mrf.mxu1 }
 0x757   : > { %1587 = vmax.xlane.f32.xlu0 %v1586_v38 }
 0x759   : > { %v1428_v39 = vpop.permute.xlu1 %1427 }
 0x75a   : > { %v1433_v40 = vsel %vm1038_vm9, %v1428_v39, 0 }
 0x75b   : > { %1442 = vmatpush.bf16.msrb.mxu0 %v1433_v40 }
 0x761   : > { %v1543_v41 = vpop.permute.xlu1 %1542 }
 0x762   : > { %v1548_v42 = vsel %vm1038_vm9, %v1543_v41, 0  ;;  %v2138_v41 = vld [vmem:[#allocation22 + $0x8] sm:$0xff] }
 0x763   : > { %1557 = vmatpush.bf16.msra.mxu0 %v1548_v42  ;;  %v2137_v42 = vld [vmem:[#allocation22] sm:$0xff] }
 0x76b   : > { %1486 = vrot.lane.b32.xlu0 %v3295_v44, %s2874_s8  ;;  %s887_s8 = scalar_lea.vmem [#allocation25], %s2033_s12 }
 0x7b2   : > { %v1476_v43 = vpop.xlane.xlu0 %1475 }
 0x7b3   : > { %v1477_v45 = vsub.f32 %v1471_v27, %v1476_v43  ;;  %v2135_v27 = vld [vmem:[#allocation16] sm:$0xff] }
 0x7b4   : > { %1665 = vmatpush.bf16.msrb.mxu2 %v2135_v27 }
 0x7b5   : > { %v1478_v46 = vmul.f32 1.442695, %v1477_v45 }
 0x7b7   : > { %2360 = vpow2.f32 %v1478_v46 }
 0x7ba   : > { %v1532_v47 = vpop.xlane.xlu0 %1531 }
 0x7bb   : > { %v1533_v48 = vsub.f32 %v1527_v29, %v1532_v47 }
 0x7bd   : > { %v2361_v49 = vpop.eup %2360  ;;  %v1534_v50 = vmul.f32 1.442695, %v1533_v48 }
 0x7be   : > { %v1480_v51 = vsel %vm1001_vm5, %v2361_v49, 0.0 }
 0x7bf   : > { %2362 = vpow2.f32 %v1534_v50  ;;  %1481 = vadd.xlane.f32.xlu2 %v1480_v51  ;;  %v2141_v51 = vld [vmem:[%s3434_s22 + $0x10] sm:$0xff] }
 0x7c2   : > { %v1420_v52 = vpop.xlane.xlu0 %1419 }
 0x7c3   : > { %2364 = vrcp.f32 %v1420_v52 }
 0x7c5   : > { %v2363_v53 = vpop.eup %2362 }
 0x7c6   : > { %v1536_v54 = vsel %vm1001_vm5, %v2363_v53, 0.0 }
 0x7c7   : > { %1537 = vadd.xlane.f32.xlu2 %v1536_v54 }
 0x7c9   : > { %v2365_v55 = vpop.eup %2364 }
 0x7ca   : > { %v1422_v56 = vmul.f32 %v2365_v55, %v2359_v0  ;;  %v1588_v57 = vpop.xlane.xlu0 %1587 }
 0x7cb   : > { %v1589_v58 = vsub.f32 %v1583_v36, %v1588_v57 }
 0x7cc   : > { %v1423_v60 = vpack.c.bf16 %v1422_v56, %v1422_v56 }
 0x7cd   : > { %v1590_v62 = vmul.f32 1.442695, %v1589_v58 }
 0x7ce   : > { %2081 = vmatmul.msk.bf16.vlgmr.msrb.gmra.mxu0 %vm1001_vm5, %v1423_v60 }
 0x7cf   : > { %2366 = vpow2.f32 %v1590_v62  ;;  %1737 = vmatpush.bf16.msrb.mxu0 %v2138_v41  ;;  %v2333_v62 = vld [vmem:[#allocation20] ss:$0 sm:$0xff] }
 0x7d3   : > { %1738 = vmatpush.bf16.msrb.mxu0 %v2137_v42 }
 0x7d5   : > { %v2367_v63 = vpop.eup %2366 }
 0x7d6   : > { %v1592_v1 = vsel %vm1001_vm5, %v2367_v63, 0.0 }
 0x7d7   : > { %1593 = vadd.xlane.f32.xlu0 %v1592_v1 }
 0x7dd   : > { %v1487_v2 = vpop.permute.xlu0 %1486 }
 0x7de   : > { %v1492_v3 = vsel %vm1038_vm9, %v1487_v2, 0 }
 0x7df   : > { %1598 = vrot.lane.b32.xlu2 %v3295_v44, %s2875_s27  ;;  %1501 = vmatpush.bf16.msrb.mxu3 %v1492_v3  ;;  %s1814_s27 = sshll.u32 %s887_s8, 4  ;;  %s1815_s27 = int_to_ptr.vmem [resolvable:$true] %s1814_s27 }
 0x832   : > { %v1482_v4 = vpop.xlane.xlu2 %1481 }
 0x833   : > { %2368 = vrcp.f32 %v1482_v4 }
 0x839   : > { %v2369_v5 = vpop.eup %2368 }
 0x83a   : > { %v1484_v6 = vmul.f32 %v2369_v5, %v2361_v49  ;;  %v1538_v7 = vpop.xlane.xlu2 %1537  ;;  %v2142_v49 = vld [vmem:[%s3434_s22 + $0x18] sm:$0xff]  ;;  %v2140_v5 = vld [vmem:[%s3434_s22 + $0x8] sm:$0xff] }
 0x83b   : > { %2370 = vrcp.f32 %v1538_v7  ;;  %1790 = vmatpush.bf16.msrb.mxu1 %v2142_v49  ;;  %v2334_v7 = vld [vmem:[#allocation23] ss:$0 sm:$0xff] }
 0x83c   : > { %v1485_v8 = vpack.c.bf16 %v1484_v6, %v1484_v6  ;;  %v2139_v6 = vld [vmem:[%s3434_s22] sm:$0xff] }
 0x83e   : > { %2083 = vmatmul.msk.bf16.vlgmr.msrb.gmra.mxu3 %vm1001_vm5, %v1485_v8 }
 0x83f   : > { %1791 = vmatpush.bf16.msrb.mxu1 %v2141_v51 }
 0x841   : > { %v2371_v9 = vpop.eup %2370 }
 0x842   : > { %v1540_v10 = vmul.f32 %v2371_v9, %v2363_v53  ;;  %v1599_v11 = vpop.permute.xlu2 %1598 }
 0x843   : > { %v1604_v12 = vsel %vm1038_vm9, %v1599_v11, 0  ;;  %1792 = vmatpush.bf16.msrb.mxu1 %v2140_v5 }
 0x844   : > { %v1541_v14 = vpack.c.bf16 %v1540_v10, %v1540_v10  ;;  %1613 = vmatpush.bf16.msra.mxu3 %v1604_v12 }
 0x846   : > { %2085 = vmatmul.msk.bf16.vlgmr.msra.gmra.mxu0 %vm1001_vm5, %v1541_v14  ;;  %v2335_v14 = vld [vmem:[%s3435_s23] ss:$0 sm:$0xff] }
 0x847   : > { %1793 = vmatpush.bf16.msrb.mxu1 %v2139_v6 }
 0x84a   : > { %v1594_v44 = vpop.xlane.xlu0 %1593 }
 0x84b   : > { %2372 = vrcp.f32 %v1594_v44  ;;  %v1444_v15 = vpop.f32.mrf.mxu0 }
 0x851   : > { %v2373_v16 = vpop.eup %2372 }
 0x852   : > { %v1596_v17 = vmul.f32 %v2373_v16, %v2367_v63 }
 0x853   : > { %v1446_v18 = vpop.f32.mrf.mxu0 }
 0x854   : > { %v1597_v19 = vpack.c.bf16 %v1596_v17, %v1596_v17 }
 0x856   : > { %2087 = vmatmul.msk.bf16.vlgmr.msra.gmra.mxu3 %vm1001_vm5, %v1597_v19 }
 0x8c1   : > { %v1503_v20 = vpop.f32.mrf.mxu3 }
 0x8c2   : > { %1620 = vrot.lane.b32.xlu1 %v1503_v20, %s3484_s29 }
 0x8c3   : > { %v1559_v21 = vpop.f32.mrf.mxu0 }
 0x8c9   : > { %v1505_v22 = vpop.f32.mrf.mxu3 }
 0x8ca   : > { %1624 = vrot.lane.b32.xlu1 %v1559_v21, %s3485_s0 }
 0x8cb   : > { %v1561_v23 = vpop.f32.mrf.mxu0 }
 0x8d9   : > { %v1615_v59 = vpop.f32.mrf.mxu3 }
 0x8da   : > { %1628 = vrot.lane.b32.xlu0 %v1615_v59, %s3486_s5  ;;  %s1812_s5 = scalar_lea.hbm %s3436_s24, %s2124_s30 }
 0x8db   : > { %s1816_s2 = sshll.u32 %s1812_s5, 4  ;;  %s1817_s2 = int_to_ptr.hbm [resolvable:$true] %s1816_s2 }
 0x8dc   : > { %s2774_s9 = sshra.s32 %s1817_s2, 4  ;;  %s2775_s9 = int_to_ptr.hbm [resolvable:$true] %s2774_s9 }
 0x8dd   : > { %s2776_s6 = scalar_lea.hbm %s2775_s9, 8  ;;  %p2781_p3 = scmp.lt.s32.totalorder %s2775_s9, %s3436_s24 }
 0x8de   : > { %p2777_p0 = scmp.ne.s32.totalorder %s2775_s9, %s2776_s6  ;;  %p2782_p4 = scmp.lt.s32.totalorder %s2780_s25, %s2776_s6 }
 0x8e0   : > { %p2778_p1 = pnand %p2777_p0, %p3055_p5  ;;  %p2783_p7 = por %p2782_p4, %p2781_p3 }
 0x8e1   : > { %v1617_v24 = vpop.f32.mrf.mxu3 }
 0x8e2   : > { %p2779_p2 = pneg %p2778_p1 }
 0x8e4   : > { %p2784_p8 = pnand %p2783_p7, %p2779_p2 }
 0x934   : > { %v1621_v61 = vpop.permute.xlu1 %1620 }
 0x935   : > { %v1631_v29 = vsel %vm1001_vm5, %v1444_v15, %v1621_v61 }
 0x93c   : > { %v1625_v28 = vpop.permute.xlu1 %1624 }
 0x93d   : > { %v1632_v30 = vsel %vm1239_vm10, %v1631_v29, %v1625_v28 }
 0x94c   : > { %v1629_v31 = vpop.permute.xlu0 %1628 }
 0x94d   : > { %v1633_v32 = vsel %vm1241_vm11, %v1632_v30, %v1629_v31 }
 0x94e   : > { %v1634_v33 = vpack.c.bf16 %v1633_v32, %v1633_v32 }
 0x950   : > { %2096 = vmatmul.msk.bf16.vlgmr.msrb.gmra.mxu2 %vm913_vm0, %v1634_v33 }
 0x9d3   : > { %v1667_v0 = vpop.f32.mrf.mxu2 }
 0x9d4   : > { %v1668_v35 = vadd.f32 %v2331_v34, %v1667_v0 }
 0x9d6   : > { %v3353_v36 = vadd.f32 %v1668_v35, %v3285_v25 }
 0x9d8   : > { %v1672_v37 = vsel %vm913_vm0, %v3353_v36, 0.0  ;;  %v1676_v38 = vmul.f32 %v3353_v36, %v3353_v36 }
 0x9d9   : > { %1673 = vadd.xlane.f32.xlu2 %v1672_v37 }
 0x9da   : > { %v1677_v39 = vsel %vm913_vm0, %v1676_v38, 0.0 }
 0x9db   : > { %v1669_v40 = vpop.f32.mrf.mxu2  ;;  %1678 = vadd.xlane.f32.xlu1 %v1677_v39 }
 0xa4c   : > { %v1674_v43 = vpop.xlane.xlu2 %1673 }
 0xa4d   : > { %v1675_v45 = vmul.f32 %v1674_v43, %v3206_v13 }
 0xa4e   : > { %v1679_v46 = vpop.xlane.xlu1 %1678 }
 0xa4f   : > { %v1681_v25 = vmul.f32 %v1675_v45, %v1675_v45  ;;  %v1680_v47 = vmul.f32 %v1679_v46, %v3206_v13  ;;  %v2332_v13 = vld [vmem:[#allocation19] ss:$0 sm:$0xff] }
 0xa51   : > { %v1682_v48 = vsub.f32 %v1680_v47, %v1681_v25 }
 0xa53   : > { %v1683_v50 = vadd.f32 1e-05, %v1682_v48 }
 0xa55   : > { %2374 = vrsqrt.f32 %v1683_v50  ;;  %vm1690_vm2 = vweird.f32 %v1683_v50 }
 0xa5b   : > { %v2375_v52 = vpop.eup %2374 }
 0xa5c   : > { %v1685_v53 = vmul.f32 %v2375_v52, %v1683_v50  ;;  %vm1691_vm1 = vweird.f32 %v2375_v52 }
 0xa5d   : > { %vm1692_vm3 = vmor %vm1690_vm2, %vm1691_vm1 }
 0xa5e   : > { %v1686_v54 = vmul.f32 %v2375_v52, %v1685_v53 }
 0xa60   : > { %v1687_v55 = vmul.f32 0.5, %v1686_v54 }
 0xa62   : > { %v1688_v56 = vsub.f32 1.5, %v1687_v55 }
 0xa64   : > { %v1689_v57 = vmul.f32 %v2375_v52, %v1688_v56 }
 0xa66   : > { %v1693_v58 = vsel %vm1692_vm3, %v2375_v52, %v1689_v57 }
 0xa67   : > { %v1698_v60 = vmul.f32 %v2332_v13, %v1693_v58 }
 0xa69   : > { %v1701_v63 = vmul.f32 %v1698_v60, %v1675_v45  ;;  %v1699_v1 = vmul.f32 %v1698_v60, %v3353_v36 }
 0xa6b   : > { %v1705_v2 = vsub.f32 %v2333_v62, %v1701_v63 }
 0xa6d   : > { %v1706_v3 = vadd.f32 %v1705_v2, %v1699_v1 }
 0xa6f   : > { %v1707_v4 = vpack.c.bf16 %v1706_v3, %v1706_v3 }
 0xa71   : > { %2105 = vmatmul.msk.bf16.vlgmr.msrb.gmra.mxu0 %vm913_vm0, %v1707_v4 }
 0xaee   : > { %v1740_v8 = vpop.f32.mrf.mxu0 }
 0xaef   : > { %v1741_v9 = vadd.f32 %v2334_v7, %v1740_v8 }
 0xaf1   : > { %v1744_v10 = vmax.f32 %v1741_v9, 0.0 }
 0xaf3   : > { %v1745_v11 = vpack.c.bf16 %v1744_v10, %v1744_v10 }
 0xaf5   : > { %2122 = vmatmul.msk.bf16.vlgmr.msrb.gmra.mxu1 %vm1782_vm4, %v1745_v11 }
 0xaf6   : > { %v1742_v12 = vpop.f32.mrf.mxu0 }
 0xb72   : > { %v1795_v44 = vpop.f32.mrf.mxu1 }
 0xb73   : > { %v1796_v15 = vadd.f32 %v2335_v14, %v1795_v44 }
 0xb75   : > { %v1799_v16 = vadd.f32 %v1796_v15, %v3353_v36 }
 0xb77   : > { %1800 = vst.msk [vmem:[%s887_s8] sm:$0xff] %vm913_vm0, %v1799_v16 }
 0xb78   : > { %2787 = shalt.err (!%p2784_p8)
}
 0xb79   : > { %2191 = dma.vmem_to_hbm [thread:$0]  (%p3055_p5), %s1815_s27, 128, %s1817_s2, %s1802_s4  }
 0xb7a   : > { %v1797_v17 = vpop.f32.mrf.mxu1 }
 0xb7b PF: > { %s3487_s28 = sld [smem:[#allocation35_spill]]  ;;  %p2258_p9 = scmp.ge.s32.totalorder %s2852_s10, 2 }
 0xb7d   : > { %p2231_p10 = pnand %p2258_p9, %p3059_p6 }
 0xb7f   : > { %p2232_p11 = pneg %p2231_p10 }
 0xb81   : > { %s1828_s7 = sand.u32 1, %s3487_s28  }
 0xb82   : > { %s1829_s29 = scalar_lea.sflag [#allocation7], %s1828_s7 }
 0xb83   : > { %2835 = dma.done.wait (%p2232_p11), %s1829_s29, 128  }
 0xb84   : > { %2837 = vsyncadd (%p2232_p11), %s1829_s29, 4294967168  ;;  %s3489_s10 = sld [smem:[#allocation37_spill]]  ;;  %s3492_s8 = smov %s2844_s1 }
 0xb85   : > { %s3490_s0 = sld [smem:[#allocation36_spill]] }
 0xb86   : > { %s3491_s30 = sld [smem:[#allocation38_spill]] }
 0xb8a   : > { %p54_p12 = scmp.ge.s32.totalorder %s3489_s10, 4  }
 0xb8b   : > { %s3493_s1 = smov %s3490_s0 }
 0xb8c   :  { %56 = sbr.rel (!%p54_p12) target bundleno = 37 (0x25), region = 195 }
 0xb91   :  { %1835 = vsyncpa [#allocation6], 1 }
 0xb92   :  { %1837 = vsyncpa [#allocation6 + $0x1], 1 }
 0xb93   :  { %1838 = vsyncpa [#allocation9], 1 }
 0xb94   :  { %1839 = vsyncpa [#allocation12], 1 }
 0xb95   :  { %1840 = vsyncpa [#allocation15], 1 }
 0xb96   :  { %1841 = vsyncpa [#allocation18], 1 }
 0xb97   :  { %1842 = vsyncpa [#allocation21], 1 }
 0xb98   :  { %1843 = vsyncpa [#allocation24], 1 }
 0xb99   :  { %1844 = vsyncpa [#allocation7], 1 }
 0xb9a   :  { %1846 = vsyncpa [#allocation7 + $0x1], 1 }

</bundles_post_ra>
